<compile_context>
chip_gen: v7x
topology: tpu7x:2x2x1
jax: 0.10.0
libtpu: 0.0.40
codegen_flags: <defaults>
</compile_context>

<pallas_src>
import jax
import jax.numpy as jnp
from jax.experimental import pallas as pl
from jax.experimental.pallas import tpu as pltpu

# ---- model dims (from the PyTorch script context) ----
INPUT_SIZE = 6          # len(['AccX','AccY','AccZ','GyroX','GyroY','GyroZ'])
HIDDEN = 12             # hidden_size
CONV_OUT = 64
KSIZE = 3
OUTPUT_SIZE = 3         # synthetic number of classes
GATES = 4 * HIDDEN      # [i | f | g | o], each HIDDEN wide

# ---- example shapes ----
B = 16                  # total batch
BT = 8                  # batch tile per grid step (multiple of 8 -> sublane aligned)
T = 8
T_OUT = T - KSIZE + 1   # valid conv => 6


def cnn_lstm_kernel(x_ref, cw_ref, cb_ref,
                    wih0_ref, whh0_ref, b0_ref,
                    wih1_ref, whh1_ref, b1_ref,
                    fcw_ref, fcb_ref, out_ref):
    x = x_ref[...]                                   # (T, BT, C_in)

    # ---- Conv1d(kernel_size=3, valid) + ReLU as ONE im2col matmul ----
    # slab row (t*BT + b), col (k*C_in + c) = x[t+k, b, c]
    slab = jnp.concatenate(
        [x[k:k + T_OUT].reshape(T_OUT * BT, INPUT_SIZE) for k in range(KSIZE)],
        axis=1)                                      # (T_OUT*BT, K*C_in)
    conv = (jnp.dot(slab, cw_ref[...], preferred_element_type=jnp.float32)
            + cb_ref[...])                           # bias broadcast once
    conv = jnp.maximum(conv, 0.0)                    # (T_OUT*BT, 64), t-major rows

    def lstm_layer(x_slab, wih_ref, whh_ref, b_ref, need_all):
        # Hoisted input projection: ONE matmul over all timesteps and all 4 gates,
        # with the combined (b_ih + b_hh) bias folded in.  Columns [i | f | g | o].
        xp = (jnp.dot(x_slab, wih_ref[...], preferred_element_type=jnp.float32)
              + b_ref[...])                          # (T_OUT*BT, 4H)
        whh = whh_ref[...]                           # (H, 4H), loaded once per layer

        h = jnp.zeros((BT, HIDDEN), jnp.float32)
        c = jnp.zeros((BT, HIDDEN), jnp.float32)
        hs = []
        for t in range(T_OUT):                       # static unroll (6 steps)
            r0 = t * BT                              # sublane-aligned row offset
            # ONE fused recurrent matmul per step (was 4 per-gate matmuls).
            pre = xp[r0:r0 + BT, :] + jnp.dot(h, whh,
                                              preferred_element_type=jnp.float32)
            sig = jax.nn.sigmoid(pre)                # one EUP pass covers i, f, o
            i_g = sig[:, 0:HIDDEN]
            f_g = sig[:, HIDDEN:2 * HIDDEN]
            o_g = sig[:, 3 * HIDDEN:4 * HIDDEN]
            g_g = jnp.tanh(pre[:, 2 * HIDDEN:3 * HIDDEN])
            c = f_g * c + i_g * g_g
            h = o_g * jnp.tanh(c)
            if need_all:
                hs.append(h)
        return hs if need_all else h

    hs0 = lstm_layer(conv, wih0_ref, whh0_ref, b0_ref, need_all=True)    # LSTM layer 0
    h0_slab = jnp.concatenate(hs0, axis=0)           # (T_OUT*BT, H), t-major rows
    h_last = lstm_layer(h0_slab, wih1_ref, whh1_ref, b1_ref, need_all=False)  # layer 1

    # Dropout(p=0.5) is identity in eval/inference mode.
    # TODO(synk): training-mode stochastic dropout not implemented (inference forward only).
    out_ref[...] = (jnp.dot(h_last, fcw_ref[...], preferred_element_type=jnp.float32)
                    + fcb_ref[...])                  # fc fused onto the last timestep


@jax.jit
def cnn_lstm_forward(x_btc, params):
    cw, cb, wih0, whh0, b0, wih1, whh1, b1, fcw, fcb = params
    x_tbc = jnp.transpose(x_btc, (1, 0, 2))          # layout plumbing: (T, B, C_in)

    in_specs = [
        pl.BlockSpec((T, BT, INPUT_SIZE), lambda i: (0, i, 0)),           # x (batch-tiled)
        pl.BlockSpec((KSIZE * INPUT_SIZE, CONV_OUT), lambda i: (0, 0)),   # conv weight (im2col)
        pl.BlockSpec((1, CONV_OUT), lambda i: (0, 0)),                    # conv bias
        pl.BlockSpec((CONV_OUT, GATES), lambda i: (0, 0)),                # wih0 (gates concat)
        pl.BlockSpec((HIDDEN, GATES), lambda i: (0, 0)),                  # whh0
        pl.BlockSpec((1, GATES), lambda i: (0, 0)),                       # b0 (b_ih + b_hh)
        pl.BlockSpec((HIDDEN, GATES), lambda i: (0, 0)),                  # wih1
        pl.BlockSpec((HIDDEN, GATES), lambda i: (0, 0)),                  # whh1
        pl.BlockSpec((1, GATES), lambda i: (0, 0)),                       # b1
        pl.BlockSpec((HIDDEN, OUTPUT_SIZE), lambda i: (0, 0)),            # fc weight
        pl.BlockSpec((1, OUTPUT_SIZE), lambda i: (0, 0)),                 # fc bias
    ]
    return pl.pallas_call(
        cnn_lstm_kernel,
        out_shape=jax.ShapeDtypeStruct((B, OUTPUT_SIZE), jnp.float32),
        grid=(B // BT,),
        in_specs=in_specs,
        out_specs=pl.BlockSpec((BT, OUTPUT_SIZE), lambda i: (i, 0)),
        compiler_params=pltpu.CompilerParams(dimension_semantics=("parallel",)),
    )(x_tbc, cw, cb, wih0, whh0, b0, wih1, whh1, b1, fcw, fcb)


def init_params(key):
    """Deterministic synthetic parameters, PyTorch-style uniform bounds."""
    ks = jax.random.split(key, 10)

    def u(k, shape, bound):
        return jax.random.uniform(k, shape, jnp.float32, -bound, bound)

    conv_bound = 1.0 / (INPUT_SIZE * KSIZE) ** 0.5
    cw = u(ks[0], (KSIZE * INPUT_SIZE, CONV_OUT), conv_bound)  # row k*C_in + c
    cb = u(ks[1], (1, CONV_OUT), conv_bound)

    lstm_bound = 1.0 / HIDDEN ** 0.5
    # layer 0 input dim = CONV_OUT ; layer 1 input dim = HIDDEN.  Gate order [i, f, g, o].
    wih0 = u(ks[2], (CONV_OUT, GATES), lstm_bound)
    whh0 = u(ks[3], (HIDDEN, GATES), lstm_bound)
    b0   = u(ks[4], (1, GATES), lstm_bound)                    # b_ih + b_hh combined
    wih1 = u(ks[5], (HIDDEN, GATES), lstm_bound)
    whh1 = u(ks[6], (HIDDEN, GATES), lstm_bound)
    b1   = u(ks[7], (1, GATES), lstm_bound)

    fc_bound = 1.0 / HIDDEN ** 0.5
    fcw = u(ks[8], (HIDDEN, OUTPUT_SIZE), fc_bound)
    fcb = u(ks[9], (1, OUTPUT_SIZE), fc_bound)

    # Note: nn.BatchNorm1d(64) is defined in __init__ but never used in forward -> omitted.
    return cw, cb, wih0, whh0, b0, wih1, whh1, b1, fcw, fcb


def reference_forward(x_btc, params):
    """Pure-JAX reference of the same forward (for correctness check)."""
    cw, cb, wih0, whh0, b0, wih1, whh1, b1, fcw, fcb = params
    hi = jax.lax.Precision.HIGHEST
    Bq = x_btc.shape[0]
    slab = jnp.concatenate([x_btc[:, k:k + T_OUT, :] for k in range(KSIZE)], axis=-1)
    slab = slab.reshape(Bq * T_OUT, KSIZE * INPUT_SIZE)
    conv = jnp.maximum(jnp.dot(slab, cw, precision=hi) + cb, 0.0)
    conv = conv.reshape(Bq, T_OUT, CONV_OUT)

    def layer(xs, wih, whh, b):
        h = jnp.zeros((Bq, HIDDEN), jnp.float32)
        c = jnp.zeros((Bq, HIDDEN), jnp.float32)
        outs = []
        for t in range(T_OUT):
            pre = (jnp.dot(xs[:, t, :], wih, precision=hi)
                   + jnp.dot(h, whh, precision=hi) + b)
            i_g = jax.nn.sigmoid(pre[:, 0:HIDDEN])
            f_g = jax.nn.sigmoid(pre[:, HIDDEN:2 * HIDDEN])
            g_g = jnp.tanh(pre[:, 2 * HIDDEN:3 * HIDDEN])
            o_g = jax.nn.sigmoid(pre[:, 3 * HIDDEN:4 * HIDDEN])
            c = f_g * c + i_g * g_g
            h = o_g * jnp.tanh(c)
            outs.append(h)
        return jnp.stack(outs, axis=1)

    h0 = layer(conv, wih0, whh0, b0)
    h1 = layer(h0, wih1, whh1, b1)
    return jnp.dot(h1[:, -1, :], fcw, precision=hi) + fcb


if __name__ == "__main__":
    key = jax.random.PRNGKey(0)
    kx, kp = jax.random.split(key)
    x = jax.random.normal(kx, (B, T, INPUT_SIZE), jnp.float32)
    params = init_params(kp)

    out = cnn_lstm_forward(x, params)
    jax.block_until_ready(out)

    assert out.shape == (B, OUTPUT_SIZE), out.shape
    assert bool(jnp.all(jnp.isfinite(out)))

    ref = reference_forward(x, params)
    assert bool(jnp.allclose(out, ref, rtol=1e-3, atol=1e-3)), \
        float(jnp.max(jnp.abs(out - ref)))
    print("KERNEL_OK")
</pallas_src>

<mosaic_0001>
module attributes {stable_mosaic.version = 11 : i64} {
  func.func @cnn_lstm_kernel(%arg0: i32, %arg1: memref<8x8x6xf32, #tpu.memory_space<vmem>>, %arg2: memref<18x64xf32, #tpu.memory_space<vmem>>, %arg3: memref<1x64xf32, #tpu.memory_space<vmem>>, %arg4: memref<64x48xf32, #tpu.memory_space<vmem>>, %arg5: memref<12x48xf32, #tpu.memory_space<vmem>>, %arg6: memref<1x48xf32, #tpu.memory_space<vmem>>, %arg7: memref<12x48xf32, #tpu.memory_space<vmem>>, %arg8: memref<12x48xf32, #tpu.memory_space<vmem>>, %arg9: memref<1x48xf32, #tpu.memory_space<vmem>>, %arg10: memref<12x3xf32, #tpu.memory_space<vmem>>, %arg11: memref<1x3xf32, #tpu.memory_space<vmem>>, %arg12: memref<8x3xf32, #tpu.memory_space<vmem>>) attributes {dimension_semantics = [#tpu.dimension_semantics<parallel>], iteration_bounds = array<i64: 2>, scalar_prefetch = 0 : i64, scratch_operands = 0 : i64, tpu.core_type = #tpu.core_type<tc>, window_params = [{transform_indices = @transform_0, window_bounds = array<i64: 8, 8, 6>}, {pipeline_mode = #tpu.pipeline_mode<synchronous>, transform_indices = @transform_1, window_bounds = array<i64: 18, 64>}, {pipeline_mode = #tpu.pipeline_mode<synchronous>, transform_indices = @transform_2, window_bounds = array<i64: 1, 64>}, {pipeline_mode = #tpu.pipeline_mode<synchronous>, transform_indices = @transform_3, window_bounds = array<i64: 64, 48>}, {pipeline_mode = #tpu.pipeline_mode<synchronous>, transform_indices = @transform_4, window_bounds = array<i64: 12, 48>}, {pipeline_mode = #tpu.pipeline_mode<synchronous>, transform_indices = @transform_5, window_bounds = array<i64: 1, 48>}, {pipeline_mode = #tpu.pipeline_mode<synchronous>, transform_indices = @transform_6, window_bounds = array<i64: 12, 48>}, {pipeline_mode = #tpu.pipeline_mode<synchronous>, transform_indices = @transform_7, window_bounds = array<i64: 12, 48>}, {pipeline_mode = #tpu.pipeline_mode<synchronous>, transform_indices = @transform_8, window_bounds = array<i64: 1, 48>}, {pipeline_mode = #tpu.pipeline_mode<synchronous>, transform_indices = @transform_9, window_bounds = array<i64: 12, 3>}, {pipeline_mode = #tpu.pipeline_mode<synchronous>, transform_indices = @transform_10, window_bounds = array<i64: 1, 3>}, {transform_indices = @transform_11, window_bounds = array<i64: 8, 3>}]} {
    %c0 = arith.constant 0 : index
    %c0_0 = arith.constant 0 : index
    %c0_1 = arith.constant 0 : index
    %0 = vector.load %arg1[%c0, %c0_0, %c0_1] : memref<8x8x6xf32, #tpu.memory_space<vmem>>, vector<8x8x6xf32>
    %1 = vector.extract_strided_slice %0 {offsets = [0, 0, 0], sizes = [6, 8, 6], strides = [1, 1, 1]} : vector<8x8x6xf32> to vector<6x8x6xf32>
    %2 = vector.shape_cast %1 : vector<6x8x6xf32> to vector<48x6xf32>
    %3 = vector.extract_strided_slice %0 {offsets = [1, 0, 0], sizes = [6, 8, 6], strides = [1, 1, 1]} : vector<8x8x6xf32> to vector<6x8x6xf32>
    %4 = vector.shape_cast %3 : vector<6x8x6xf32> to vector<48x6xf32>
    %5 = vector.extract_strided_slice %0 {offsets = [2, 0, 0], sizes = [6, 8, 6], strides = [1, 1, 1]} : vector<8x8x6xf32> to vector<6x8x6xf32>
    %6 = vector.shape_cast %5 : vector<6x8x6xf32> to vector<48x6xf32>
    %7 = tpu.concatenate %2, %4, %6 in 1 : vector<48x6xf32>, vector<48x6xf32>, vector<48x6xf32> -> vector<48x18xf32>
    %c0_2 = arith.constant 0 : index
    %c0_3 = arith.constant 0 : index
    %8 = vector.load %arg2[%c0_2, %c0_3] : memref<18x64xf32, #tpu.memory_space<vmem>>, vector<18x64xf32>
    %cst = arith.constant dense<0.000000e+00> : vector<48x64xf32>
    %9 = tpu.matmul %7, %8, %cst {dimension_numbers = #tpu.dot_dimension_numbers<[1], [0], [0], [1], [0, 0, 1, 1], [], []>} : vector<48x18xf32>, vector<18x64xf32>, vector<48x64xf32> -> vector<48x64xf32>
    %c0_4 = arith.constant 0 : index
    %c0_5 = arith.constant 0 : index
    %10 = vector.load %arg3[%c0_4, %c0_5] : memref<1x64xf32, #tpu.memory_space<vmem>>, vector<1x64xf32>
    %11 = vector.broadcast %10 : vector<1x64xf32> to vector<48x64xf32>
    %12 = arith.addf %9, %11 : vector<48x64xf32>
    %cst_6 = arith.constant 0.000000e+00 : f32
    %13 = vector.broadcast %cst_6 : f32 to vector<48x64xf32>
    %14 = arith.maximumf %12, %13 : vector<48x64xf32>
    %c0_7 = arith.constant 0 : index
    %c0_8 = arith.constant 0 : index
    %15 = vector.load %arg4[%c0_7, %c0_8] : memref<64x48xf32, #tpu.memory_space<vmem>>, vector<64x48xf32>
    %cst_9 = arith.constant dense<0.000000e+00> : vector<48x48xf32>
    %16 = tpu.matmul %14, %15, %cst_9 {dimension_numbers = #tpu.dot_dimension_numbers<[1], [0], [0], [1], [0, 0, 1, 1], [], []>} : vector<48x64xf32>, vector<64x48xf32>, vector<48x48xf32> -> vector<48x48xf32>
    %c0_10 = arith.constant 0 : index
    %c0_11 = arith.constant 0 : index
    %17 = vector.load %arg6[%c0_10, %c0_11] : memref<1x48xf32, #tpu.memory_space<vmem>>, vector<1x48xf32>
    %18 = vector.broadcast %17 : vector<1x48xf32> to vector<48x48xf32>
    %19 = arith.addf %16, %18 : vector<48x48xf32>
    %c0_12 = arith.constant 0 : index
    %c0_13 = arith.constant 0 : index
    %20 = vector.load %arg5[%c0_12, %c0_13] : memref<12x48xf32, #tpu.memory_space<vmem>>, vector<12x48xf32>
    %cst_14 = arith.constant 0.000000e+00 : f32
    %21 = vector.broadcast %cst_14 : f32 to vector<8x12xf32>
    %cst_15 = arith.constant 0.000000e+00 : f32
    %22 = vector.broadcast %cst_15 : f32 to vector<8x12xf32>
    %23 = vector.extract_strided_slice %19 {offsets = [0, 0], sizes = [8, 48], strides = [1, 1]} : vector<48x48xf32> to vector<8x48xf32>
    %cst_16 = arith.constant dense<0.000000e+00> : vector<8x48xf32>
    %24 = tpu.matmul %21, %20, %cst_16 {dimension_numbers = #tpu.dot_dimension_numbers<[1], [0], [0], [1], [0, 0, 1, 1], [], []>} : vector<8x12xf32>, vector<12x48xf32>, vector<8x48xf32> -> vector<8x48xf32>
    %25 = arith.addf %23, %24 : vector<8x48xf32>
    %26 = arith.negf %25 : vector<8x48xf32>
    %27 = math.exp %26 : vector<8x48xf32>
    %cst_17 = arith.constant 1.000000e+00 : f32
    %28 = vector.broadcast %cst_17 : f32 to vector<8x48xf32>
    %29 = arith.addf %28, %27 : vector<8x48xf32>
    %30 = arith.divf %28, %29 : vector<8x48xf32>
    %31 = vector.extract_strided_slice %30 {offsets = [0, 0], sizes = [8, 12], strides = [1, 1]} : vector<8x48xf32> to vector<8x12xf32>
    %32 = vector.extract_strided_slice %30 {offsets = [0, 12], sizes = [8, 12], strides = [1, 1]} : vector<8x48xf32> to vector<8x12xf32>
    %33 = vector.extract_strided_slice %30 {offsets = [0, 36], sizes = [8, 12], strides = [1, 1]} : vector<8x48xf32> to vector<8x12xf32>
    %34 = vector.extract_strided_slice %25 {offsets = [0, 24], sizes = [8, 12], strides = [1, 1]} : vector<8x48xf32> to vector<8x12xf32>
    %35 = math.tanh %34 : vector<8x12xf32>
    %36 = arith.mulf %32, %22 : vector<8x12xf32>
    %37 = arith.mulf %31, %35 : vector<8x12xf32>
    %38 = arith.addf %36, %37 : vector<8x12xf32>
    %39 = math.tanh %38 : vector<8x12xf32>
    %40 = arith.mulf %33, %39 : vector<8x12xf32>
    %41 = vector.extract_strided_slice %19 {offsets = [8, 0], sizes = [8, 48], strides = [1, 1]} : vector<48x48xf32> to vector<8x48xf32>
    %cst_18 = arith.constant dense<0.000000e+00> : vector<8x48xf32>
    %42 = tpu.matmul %40, %20, %cst_18 {dimension_numbers = #tpu.dot_dimension_numbers<[1], [0], [0], [1], [0, 0, 1, 1], [], []>} : vector<8x12xf32>, vector<12x48xf32>, vector<8x48xf32> -> vector<8x48xf32>
    %43 = arith.addf %41, %42 : vector<8x48xf32>
    %44 = arith.negf %43 : vector<8x48xf32>
    %45 = math.exp %44 : vector<8x48xf32>
    %cst_19 = arith.constant 1.000000e+00 : f32
    %46 = vector.broadcast %cst_19 : f32 to vector<8x48xf32>
    %47 = arith.addf %46, %45 : vector<8x48xf32>
    %48 = arith.divf %46, %47 : vector<8x48xf32>
    %49 = vector.extract_strided_slice %48 {offsets = [0, 0], sizes = [8, 12], strides = [1, 1]} : vector<8x48xf32> to vector<8x12xf32>
    %50 = vector.extract_strided_slice %48 {offsets = [0, 12], sizes = [8, 12], strides = [1, 1]} : vector<8x48xf32> to vector<8x12xf32>
    %51 = vector.extract_strided_slice %48 {offsets = [0, 36], sizes = [8, 12], strides = [1, 1]} : vector<8x48xf32> to vector<8x12xf32>
    %52 = vector.extract_strided_slice %43 {offsets = [0, 24], sizes = [8, 12], strides = [1, 1]} : vector<8x48xf32> to vector<8x12xf32>
    %53 = math.tanh %52 : vector<8x12xf32>
    %54 = arith.mulf %50, %38 : vector<8x12xf32>
    %55 = arith.mulf %49, %53 : vector<8x12xf32>
    %56 = arith.addf %54, %55 : vector<8x12xf32>
    %57 = math.tanh %56 : vector<8x12xf32>
    %58 = arith.mulf %51, %57 : vector<8x12xf32>
    %59 = vector.extract_strided_slice %19 {offsets = [16, 0], sizes = [8, 48], strides = [1, 1]} : vector<48x48xf32> to vector<8x48xf32>
    %cst_20 = arith.constant dense<0.000000e+00> : vector<8x48xf32>
    %60 = tpu.matmul %58, %20, %cst_20 {dimension_numbers = #tpu.dot_dimension_numbers<[1], [0], [0], [1], [0, 0, 1, 1], [], []>} : vector<8x12xf32>, vector<12x48xf32>, vector<8x48xf32> -> vector<8x48xf32>
    %61 = arith.addf %59, %60 : vector<8x48xf32>
    %62 = arith.negf %61 : vector<8x48xf32>
    %63 = math.exp %62 : vector<8x48xf32>
    %cst_21 = arith.constant 1.000000e+00 : f32
    %64 = vector.broadcast %cst_21 : f32 to vector<8x48xf32>
    %65 = arith.addf %64, %63 : vector<8x48xf32>
    %66 = arith.divf %64, %65 : vector<8x48xf32>
    %67 = vector.extract_strided_slice %66 {offsets = [0, 0], sizes = [8, 12], strides = [1, 1]} : vector<8x48xf32> to vector<8x12xf32>
    %68 = vector.extract_strided_slice %66 {offsets = [0, 12], sizes = [8, 12], strides = [1, 1]} : vector<8x48xf32> to vector<8x12xf32>
    %69 = vector.extract_strided_slice %66 {offsets = [0, 36], sizes = [8, 12], strides = [1, 1]} : vector<8x48xf32> to vector<8x12xf32>
    %70 = vector.extract_strided_slice %61 {offsets = [0, 24], sizes = [8, 12], strides = [1, 1]} : vector<8x48xf32> to vector<8x12xf32>
    %71 = math.tanh %70 : vector<8x12xf32>
    %72 = arith.mulf %68, %56 : vector<8x12xf32>
    %73 = arith.mulf %67, %71 : vector<8x12xf32>
    %74 = arith.addf %72, %73 : vector<8x12xf32>
    %75 = math.tanh %74 : vector<8x12xf32>
    %76 = arith.mulf %69, %75 : vector<8x12xf32>
    %77 = vector.extract_strided_slice %19 {offsets = [24, 0], sizes = [8, 48], strides = [1, 1]} : vector<48x48xf32> to vector<8x48xf32>
    %cst_22 = arith.constant dense<0.000000e+00> : vector<8x48xf32>
    %78 = tpu.matmul %76, %20, %cst_22 {dimension_numbers = #tpu.dot_dimension_numbers<[1], [0], [0], [1], [0, 0, 1, 1], [], []>} : vector<8x12xf32>, vector<12x48xf32>, vector<8x48xf32> -> vector<8x48xf32>
    %79 = arith.addf %77, %78 : vector<8x48xf32>
    %80 = arith.negf %79 : vector<8x48xf32>
    %81 = math.exp %80 : vector<8x48xf32>
    %cst_23 = arith.constant 1.000000e+00 : f32
    %82 = vector.broadcast %cst_23 : f32 to vector<8x48xf32>
    %83 = arith.addf %82, %81 : vector<8x48xf32>
    %84 = arith.divf %82, %83 : vector<8x48xf32>
    %85 = vector.extract_strided_slice %84 {offsets = [0, 0], sizes = [8, 12], strides = [1, 1]} : vector<8x48xf32> to vector<8x12xf32>
    %86 = vector.extract_strided_slice %84 {offsets = [0, 12], sizes = [8, 12], strides = [1, 1]} : vector<8x48xf32> to vector<8x12xf32>
    %87 = vector.extract_strided_slice %84 {offsets = [0, 36], sizes = [8, 12], strides = [1, 1]} : vector<8x48xf32> to vector<8x12xf32>
    %88 = vector.extract_strided_slice %79 {offsets = [0, 24], sizes = [8, 12], strides = [1, 1]} : vector<8x48xf32> to vector<8x12xf32>
    %89 = math.tanh %88 : vector<8x12xf32>
    %90 = arith.mulf %86, %74 : vector<8x12xf32>
    %91 = arith.mulf %85, %89 : vector<8x12xf32>
    %92 = arith.addf %90, %91 : vector<8x12xf32>
    %93 = math.tanh %92 : vector<8x12xf32>
    %94 = arith.mulf %87, %93 : vector<8x12xf32>
    %95 = vector.extract_strided_slice %19 {offsets = [32, 0], sizes = [8, 48], strides = [1, 1]} : vector<48x48xf32> to vector<8x48xf32>
    %cst_24 = arith.constant dense<0.000000e+00> : vector<8x48xf32>
    %96 = tpu.matmul %94, %20, %cst_24 {dimension_numbers = #tpu.dot_dimension_numbers<[1], [0], [0], [1], [0, 0, 1, 1], [], []>} : vector<8x12xf32>, vector<12x48xf32>, vector<8x48xf32> -> vector<8x48xf32>
    %97 = arith.addf %95, %96 : vector<8x48xf32>
    %98 = arith.negf %97 : vector<8x48xf32>
    %99 = math.exp %98 : vector<8x48xf32>
    %cst_25 = arith.constant 1.000000e+00 : f32
    %100 = vector.broadcast %cst_25 : f32 to vector<8x48xf32>
    %101 = arith.addf %100, %99 : vector<8x48xf32>
    %102 = arith.divf %100, %101 : vector<8x48xf32>
    %103 = vector.extract_strided_slice %102 {offsets = [0, 0], sizes = [8, 12], strides = [1, 1]} : vector<8x48xf32> to vector<8x12xf32>
    %104 = vector.extract_strided_slice %102 {offsets = [0, 12], sizes = [8, 12], strides = [1, 1]} : vector<8x48xf32> to vector<8x12xf32>
    %105 = vector.extract_strided_slice %102 {offsets = [0, 36], sizes = [8, 12], strides = [1, 1]} : vector<8x48xf32> to vector<8x12xf32>
    %106 = vector.extract_strided_slice %97 {offsets = [0, 24], sizes = [8, 12], strides = [1, 1]} : vector<8x48xf32> to vector<8x12xf32>
    %107 = math.tanh %106 : vector<8x12xf32>
    %108 = arith.mulf %104, %92 : vector<8x12xf32>
    %109 = arith.mulf %103, %107 : vector<8x12xf32>
    %110 = arith.addf %108, %109 : vector<8x12xf32>
    %111 = math.tanh %110 : vector<8x12xf32>
    %112 = arith.mulf %105, %111 : vector<8x12xf32>
    %113 = vector.extract_strided_slice %19 {offsets = [40, 0], sizes = [8, 48], strides = [1, 1]} : vector<48x48xf32> to vector<8x48xf32>
    %cst_26 = arith.constant dense<0.000000e+00> : vector<8x48xf32>
    %114 = tpu.matmul %112, %20, %cst_26 {dimension_numbers = #tpu.dot_dimension_numbers<[1], [0], [0], [1], [0, 0, 1, 1], [], []>} : vector<8x12xf32>, vector<12x48xf32>, vector<8x48xf32> -> vector<8x48xf32>
    %115 = arith.addf %113, %114 : vector<8x48xf32>
    %116 = arith.negf %115 : vector<8x48xf32>
    %117 = math.exp %116 : vector<8x48xf32>
    %cst_27 = arith.constant 1.000000e+00 : f32
    %118 = vector.broadcast %cst_27 : f32 to vector<8x48xf32>
    %119 = arith.addf %118, %117 : vector<8x48xf32>
    %120 = arith.divf %118, %119 : vector<8x48xf32>
    %121 = vector.extract_strided_slice %120 {offsets = [0, 0], sizes = [8, 12], strides = [1, 1]} : vector<8x48xf32> to vector<8x12xf32>
    %122 = vector.extract_strided_slice %120 {offsets = [0, 12], sizes = [8, 12], strides = [1, 1]} : vector<8x48xf32> to vector<8x12xf32>
    %123 = vector.extract_strided_slice %120 {offsets = [0, 36], sizes = [8, 12], strides = [1, 1]} : vector<8x48xf32> to vector<8x12xf32>
    %124 = vector.extract_strided_slice %115 {offsets = [0, 24], sizes = [8, 12], strides = [1, 1]} : vector<8x48xf32> to vector<8x12xf32>
    %125 = math.tanh %124 : vector<8x12xf32>
    %126 = arith.mulf %122, %110 : vector<8x12xf32>
    %127 = arith.mulf %121, %125 : vector<8x12xf32>
    %128 = arith.addf %126, %127 : vector<8x12xf32>
    %129 = math.tanh %128 : vector<8x12xf32>
    %130 = arith.mulf %123, %129 : vector<8x12xf32>
    %131 = tpu.concatenate %40, %58, %76, %94, %112, %130 in 0 : vector<8x12xf32>, vector<8x12xf32>, vector<8x12xf32>, vector<8x12xf32>, vector<8x12xf32>, vector<8x12xf32> -> vector<48x12xf32>
    %c0_28 = arith.constant 0 : index
    %c0_29 = arith.constant 0 : index
    %132 = vector.load %arg7[%c0_28, %c0_29] : memref<12x48xf32, #tpu.memory_space<vmem>>, vector<12x48xf32>
    %cst_30 = arith.constant dense<0.000000e+00> : vector<48x48xf32>
    %133 = tpu.matmul %131, %132, %cst_30 {dimension_numbers = #tpu.dot_dimension_numbers<[1], [0], [0], [1], [0, 0, 1, 1], [], []>} : vector<48x12xf32>, vector<12x48xf32>, vector<48x48xf32> -> vector<48x48xf32>
    %c0_31 = arith.constant 0 : index
    %c0_32 = arith.constant 0 : index
    %134 = vector.load %arg9[%c0_31, %c0_32] : memref<1x48xf32, #tpu.memory_space<vmem>>, vector<1x48xf32>
    %135 = vector.broadcast %134 : vector<1x48xf32> to vector<48x48xf32>
    %136 = arith.addf %133, %135 : vector<48x48xf32>
    %c0_33 = arith.constant 0 : index
    %c0_34 = arith.constant 0 : index
    %137 = vector.load %arg8[%c0_33, %c0_34] : memref<12x48xf32, #tpu.memory_space<vmem>>, vector<12x48xf32>
    %cst_35 = arith.constant 0.000000e+00 : f32
    %138 = vector.broadcast %cst_35 : f32 to vector<8x12xf32>
    %cst_36 = arith.constant 0.000000e+00 : f32
    %139 = vector.broadcast %cst_36 : f32 to vector<8x12xf32>
    %140 = vector.extract_strided_slice %136 {offsets = [0, 0], sizes = [8, 48], strides = [1, 1]} : vector<48x48xf32> to vector<8x48xf32>
    %cst_37 = arith.constant dense<0.000000e+00> : vector<8x48xf32>
    %141 = tpu.matmul %138, %137, %cst_37 {dimension_numbers = #tpu.dot_dimension_numbers<[1], [0], [0], [1], [0, 0, 1, 1], [], []>} : vector<8x12xf32>, vector<12x48xf32>, vector<8x48xf32> -> vector<8x48xf32>
    %142 = arith.addf %140, %141 : vector<8x48xf32>
    %143 = arith.negf %142 : vector<8x48xf32>
    %144 = math.exp %143 : vector<8x48xf32>
    %cst_38 = arith.constant 1.000000e+00 : f32
    %145 = vector.broadcast %cst_38 : f32 to vector<8x48xf32>
    %146 = arith.addf %145, %144 : vector<8x48xf32>
    %147 = arith.divf %145, %146 : vector<8x48xf32>
    %148 = vector.extract_strided_slice %147 {offsets = [0, 0], sizes = [8, 12], strides = [1, 1]} : vector<8x48xf32> to vector<8x12xf32>
    %149 = vector.extract_strided_slice %147 {offsets = [0, 12], sizes = [8, 12], strides = [1, 1]} : vector<8x48xf32> to vector<8x12xf32>
    %150 = vector.extract_strided_slice %147 {offsets = [0, 36], sizes = [8, 12], strides = [1, 1]} : vector<8x48xf32> to vector<8x12xf32>
    %151 = vector.extract_strided_slice %142 {offsets = [0, 24], sizes = [8, 12], strides = [1, 1]} : vector<8x48xf32> to vector<8x12xf32>
    %152 = math.tanh %151 : vector<8x12xf32>
    %153 = arith.mulf %149, %139 : vector<8x12xf32>
    %154 = arith.mulf %148, %152 : vector<8x12xf32>
    %155 = arith.addf %153, %154 : vector<8x12xf32>
    %156 = math.tanh %155 : vector<8x12xf32>
    %157 = arith.mulf %150, %156 : vector<8x12xf32>
    %158 = vector.extract_strided_slice %136 {offsets = [8, 0], sizes = [8, 48], strides = [1, 1]} : vector<48x48xf32> to vector<8x48xf32>
    %cst_39 = arith.constant dense<0.000000e+00> : vector<8x48xf32>
    %159 = tpu.matmul %157, %137, %cst_39 {dimension_numbers = #tpu.dot_dimension_numbers<[1], [0], [0], [1], [0, 0, 1, 1], [], []>} : vector<8x12xf32>, vector<12x48xf32>, vector<8x48xf32> -> vector<8x48xf32>
    %160 = arith.addf %158, %159 : vector<8x48xf32>
    %161 = arith.negf %160 : vector<8x48xf32>
    %162 = math.exp %161 : vector<8x48xf32>
    %cst_40 = arith.constant 1.000000e+00 : f32
    %163 = vector.broadcast %cst_40 : f32 to vector<8x48xf32>
    %164 = arith.addf %163, %162 : vector<8x48xf32>
    %165 = arith.divf %163, %164 : vector<8x48xf32>
    %166 = vector.extract_strided_slice %165 {offsets = [0, 0], sizes = [8, 12], strides = [1, 1]} : vector<8x48xf32> to vector<8x12xf32>
    %167 = vector.extract_strided_slice %165 {offsets = [0, 12], sizes = [8, 12], strides = [1, 1]} : vector<8x48xf32> to vector<8x12xf32>
    %168 = vector.extract_strided_slice %165 {offsets = [0, 36], sizes = [8, 12], strides = [1, 1]} : vector<8x48xf32> to vector<8x12xf32>
    %169 = vector.extract_strided_slice %160 {offsets = [0, 24], sizes = [8, 12], strides = [1, 1]} : vector<8x48xf32> to vector<8x12xf32>
    %170 = math.tanh %169 : vector<8x12xf32>
    %171 = arith.mulf %167, %155 : vector<8x12xf32>
    %172 = arith.mulf %166, %170 : vector<8x12xf32>
    %173 = arith.addf %171, %172 : vector<8x12xf32>
    %174 = math.tanh %173 : vector<8x12xf32>
    %175 = arith.mulf %168, %174 : vector<8x12xf32>
    %176 = vector.extract_strided_slice %136 {offsets = [16, 0], sizes = [8, 48], strides = [1, 1]} : vector<48x48xf32> to vector<8x48xf32>
    %cst_41 = arith.constant dense<0.000000e+00> : vector<8x48xf32>
    %177 = tpu.matmul %175, %137, %cst_41 {dimension_numbers = #tpu.dot_dimension_numbers<[1], [0], [0], [1], [0, 0, 1, 1], [], []>} : vector<8x12xf32>, vector<12x48xf32>, vector<8x48xf32> -> vector<8x48xf32>
    %178 = arith.addf %176, %177 : vector<8x48xf32>
    %179 = arith.negf %178 : vector<8x48xf32>
    %180 = math.exp %179 : vector<8x48xf32>
    %cst_42 = arith.constant 1.000000e+00 : f32
    %181 = vector.broadcast %cst_42 : f32 to vector<8x48xf32>
    %182 = arith.addf %181, %180 : vector<8x48xf32>
    %183 = arith.divf %181, %182 : vector<8x48xf32>
    %184 = vector.extract_strided_slice %183 {offsets = [0, 0], sizes = [8, 12], strides = [1, 1]} : vector<8x48xf32> to vector<8x12xf32>
    %185 = vector.extract_strided_slice %183 {offsets = [0, 12], sizes = [8, 12], strides = [1, 1]} : vector<8x48xf32> to vector<8x12xf32>
    %186 = vector.extract_strided_slice %183 {offsets = [0, 36], sizes = [8, 12], strides = [1, 1]} : vector<8x48xf32> to vector<8x12xf32>
    %187 = vector.extract_strided_slice %178 {offsets = [0, 24], sizes = [8, 12], strides = [1, 1]} : vector<8x48xf32> to vector<8x12xf32>
    %188 = math.tanh %187 : vector<8x12xf32>
    %189 = arith.mulf %185, %173 : vector<8x12xf32>
    %190 = arith.mulf %184, %188 : vector<8x12xf32>
    %191 = arith.addf %189, %190 : vector<8x12xf32>
    %192 = math.tanh %191 : vector<8x12xf32>
    %193 = arith.mulf %186, %192 : vector<8x12xf32>
    %194 = vector.extract_strided_slice %136 {offsets = [24, 0], sizes = [8, 48], strides = [1, 1]} : vector<48x48xf32> to vector<8x48xf32>
    %cst_43 = arith.constant dense<0.000000e+00> : vector<8x48xf32>
    %195 = tpu.matmul %193, %137, %cst_43 {dimension_numbers = #tpu.dot_dimension_numbers<[1], [0], [0], [1], [0, 0, 1, 1], [], []>} : vector<8x12xf32>, vector<12x48xf32>, vector<8x48xf32> -> vector<8x48xf32>
    %196 = arith.addf %194, %195 : vector<8x48xf32>
    %197 = arith.negf %196 : vector<8x48xf32>
    %198 = math.exp %197 : vector<8x48xf32>
    %cst_44 = arith.constant 1.000000e+00 : f32
    %199 = vector.broadcast %cst_44 : f32 to vector<8x48xf32>
    %200 = arith.addf %199, %198 : vector<8x48xf32>
    %201 = arith.divf %199, %200 : vector<8x48xf32>
    %202 = vector.extract_strided_slice %201 {offsets = [0, 0], sizes = [8, 12], strides = [1, 1]} : vector<8x48xf32> to vector<8x12xf32>
    %203 = vector.extract_strided_slice %201 {offsets = [0, 12], sizes = [8, 12], strides = [1, 1]} : vector<8x48xf32> to vector<8x12xf32>
    %204 = vector.extract_strided_slice %201 {offsets = [0, 36], sizes = [8, 12], strides = [1, 1]} : vector<8x48xf32> to vector<8x12xf32>
    %205 = vector.extract_strided_slice %196 {offsets = [0, 24], sizes = [8, 12], strides = [1, 1]} : vector<8x48xf32> to vector<8x12xf32>
    %206 = math.tanh %205 : vector<8x12xf32>
    %207 = arith.mulf %203, %191 : vector<8x12xf32>
    %208 = arith.mulf %202, %206 : vector<8x12xf32>
    %209 = arith.addf %207, %208 : vector<8x12xf32>
    %210 = math.tanh %209 : vector<8x12xf32>
    %211 = arith.mulf %204, %210 : vector<8x12xf32>
    %212 = vector.extract_strided_slice %136 {offsets = [32, 0], sizes = [8, 48], strides = [1, 1]} : vector<48x48xf32> to vector<8x48xf32>
    %cst_45 = arith.constant dense<0.000000e+00> : vector<8x48xf32>
    %213 = tpu.matmul %211, %137, %cst_45 {dimension_numbers = #tpu.dot_dimension_numbers<[1], [0], [0], [1], [0, 0, 1, 1], [], []>} : vector<8x12xf32>, vector<12x48xf32>, vector<8x48xf32> -> vector<8x48xf32>
    %214 = arith.addf %212, %213 : vector<8x48xf32>
    %215 = arith.negf %214 : vector<8x48xf32>
    %216 = math.exp %215 : vector<8x48xf32>
    %cst_46 = arith.constant 1.000000e+00 : f32
    %217 = vector.broadcast %cst_46 : f32 to vector<8x48xf32>
    %218 = arith.addf %217, %216 : vector<8x48xf32>
    %219 = arith.divf %217, %218 : vector<8x48xf32>
    %220 = vector.extract_strided_slice %219 {offsets = [0, 0], sizes = [8, 12], strides = [1, 1]} : vector<8x48xf32> to vector<8x12xf32>
    %221 = vector.extract_strided_slice %219 {offsets = [0, 12], sizes = [8, 12], strides = [1, 1]} : vector<8x48xf32> to vector<8x12xf32>
    %222 = vector.extract_strided_slice %219 {offsets = [0, 36], sizes = [8, 12], strides = [1, 1]} : vector<8x48xf32> to vector<8x12xf32>
    %223 = vector.extract_strided_slice %214 {offsets = [0, 24], sizes = [8, 12], strides = [1, 1]} : vector<8x48xf32> to vector<8x12xf32>
    %224 = math.tanh %223 : vector<8x12xf32>
    %225 = arith.mulf %221, %209 : vector<8x12xf32>
    %226 = arith.mulf %220, %224 : vector<8x12xf32>
    %227 = arith.addf %225, %226 : vector<8x12xf32>
    %228 = math.tanh %227 : vector<8x12xf32>
    %229 = arith.mulf %222, %228 : vector<8x12xf32>
    %230 = vector.extract_strided_slice %136 {offsets = [40, 0], sizes = [8, 48], strides = [1, 1]} : vector<48x48xf32> to vector<8x48xf32>
    %cst_47 = arith.constant dense<0.000000e+00> : vector<8x48xf32>
    %231 = tpu.matmul %229, %137, %cst_47 {dimension_numbers = #tpu.dot_dimension_numbers<[1], [0], [0], [1], [0, 0, 1, 1], [], []>} : vector<8x12xf32>, vector<12x48xf32>, vector<8x48xf32> -> vector<8x48xf32>
    %232 = arith.addf %230, %231 : vector<8x48xf32>
    %233 = arith.negf %232 : vector<8x48xf32>
    %234 = math.exp %233 : vector<8x48xf32>
    %cst_48 = arith.constant 1.000000e+00 : f32
    %235 = vector.broadcast %cst_48 : f32 to vector<8x48xf32>
    %236 = arith.addf %235, %234 : vector<8x48xf32>
    %237 = arith.divf %235, %236 : vector<8x48xf32>
    %238 = vector.extract_strided_slice %237 {offsets = [0, 0], sizes = [8, 12], strides = [1, 1]} : vector<8x48xf32> to vector<8x12xf32>
    %239 = vector.extract_strided_slice %237 {offsets = [0, 12], sizes = [8, 12], strides = [1, 1]} : vector<8x48xf32> to vector<8x12xf32>
    %240 = vector.extract_strided_slice %237 {offsets = [0, 36], sizes = [8, 12], strides = [1, 1]} : vector<8x48xf32> to vector<8x12xf32>
    %241 = vector.extract_strided_slice %232 {offsets = [0, 24], sizes = [8, 12], strides = [1, 1]} : vector<8x48xf32> to vector<8x12xf32>
    %242 = math.tanh %241 : vector<8x12xf32>
    %243 = arith.mulf %239, %227 : vector<8x12xf32>
    %244 = arith.mulf %238, %242 : vector<8x12xf32>
    %245 = arith.addf %243, %244 : vector<8x12xf32>
    %246 = math.tanh %245 : vector<8x12xf32>
    %247 = arith.mulf %240, %246 : vector<8x12xf32>
    %c0_49 = arith.constant 0 : index
    %c0_50 = arith.constant 0 : index
    %248 = vector.load %arg10[%c0_49, %c0_50] : memref<12x3xf32, #tpu.memory_space<vmem>>, vector<12x3xf32>
    %cst_51 = arith.constant dense<0.000000e+00> : vector<8x3xf32>
    %249 = tpu.matmul %247, %248, %cst_51 {dimension_numbers = #tpu.dot_dimension_numbers<[1], [0], [0], [1], [0, 0, 1, 1], [], []>} : vector<8x12xf32>, vector<12x3xf32>, vector<8x3xf32> -> vector<8x3xf32>
    %c0_52 = arith.constant 0 : index
    %c0_53 = arith.constant 0 : index
    %250 = vector.load %arg11[%c0_52, %c0_53] : memref<1x3xf32, #tpu.memory_space<vmem>>, vector<1x3xf32>
    %251 = vector.broadcast %250 : vector<1x3xf32> to vector<8x3xf32>
    %252 = arith.addf %249, %251 : vector<8x3xf32>
    %c0_54 = arith.constant 0 : index
    %c0_55 = arith.constant 0 : index
    %253 = vector.load %arg12[%c0_54, %c0_55] : memref<8x3xf32, #tpu.memory_space<vmem>>, vector<8x3xf32>
    tpu.vector_store %arg12[%c0_54, %c0_55], %252 {strides = array<i32>} : memref<8x3xf32, #tpu.memory_space<vmem>>, vector<8x3xf32>,
    return
  }
  func.func @transform_0(%arg0: i32) -> (i32, i32, i32) {
    %c0_i32 = arith.constant 0 : i32
    %c0_i32_0 = arith.constant 0 : i32
    %c0_i32_1 = arith.constant 0 : i32
    return %c0_i32, %arg0, %c0_i32_0 : i32, i32, i32
  }
  func.func @transform_1(%arg0: i32) -> (i32, i32) {
    %c0_i32 = arith.constant 0 : i32
    %c0_i32_0 = arith.constant 0 : i32
    %c0_i32_1 = arith.constant 0 : i32
    return %c0_i32, %c0_i32_0 : i32, i32
  }
  func.func @transform_2(%arg0: i32) -> (i32, i32) {
    %c0_i32 = arith.constant 0 : i32
    %c0_i32_0 = arith.constant 0 : i32
    %c0_i32_1 = arith.constant 0 : i32
    return %c0_i32, %c0_i32_0 : i32, i32
  }
  func.func @transform_3(%arg0: i32) -> (i32, i32) {
    %c0_i32 = arith.constant 0 : i32
    %c0_i32_0 = arith.constant 0 : i32
    %c0_i32_1 = arith.constant 0 : i32
    return %c0_i32, %c0_i32_0 : i32, i32
  }
  func.func @transform_4(%arg0: i32) -> (i32, i32) {
    %c0_i32 = arith.constant 0 : i32
    %c0_i32_0 = arith.constant 0 : i32
    %c0_i32_1 = arith.constant 0 : i32
    return %c0_i32, %c0_i32_0 : i32, i32
  }
  func.func @transform_5(%arg0: i32) -> (i32, i32) {
    %c0_i32 = arith.constant 0 : i32
    %c0_i32_0 = arith.constant 0 : i32
    %c0_i32_1 = arith.constant 0 : i32
    return %c0_i32, %c0_i32_0 : i32, i32
  }
  func.func @transform_6(%arg0: i32) -> (i32, i32) {
    %c0_i32 = arith.constant 0 : i32
    %c0_i32_0 = arith.constant 0 : i32
    %c0_i32_1 = arith.constant 0 : i32
    return %c0_i32, %c0_i32_0 : i32, i32
  }
  func.func @transform_7(%arg0: i32) -> (i32, i32) {
    %c0_i32 = arith.constant 0 : i32
    %c0_i32_0 = arith.constant 0 : i32
    %c0_i32_1 = arith.constant 0 : i32
    return %c0_i32, %c0_i32_0 : i32, i32
  }
  func.func @transform_8(%arg0: i32) -> (i32, i32) {
    %c0_i32 = arith.constant 0 : i32
    %c0_i32_0 = arith.constant 0 : i32
    %c0_i32_1 = arith.constant 0 : i32
    return %c0_i32, %c0_i32_0 : i32, i32
  }
  func.func @transform_9(%arg0: i32) -> (i32, i32) {
    %c0_i32 = arith.constant 0 : i32
    %c0_i32_0 = arith.constant 0 : i32
    %c0_i32_1 = arith.constant 0 : i32
    return %c0_i32, %c0_i32_0 : i32, i32
  }
  func.func @transform_10(%arg0: i32) -> (i32, i32) {
    %c0_i32 = arith.constant 0 : i32
    %c0_i32_0 = arith.constant 0 : i32
    %c0_i32_1 = arith.constant 0 : i32
    return %c0_i32, %c0_i32_0 : i32, i32
  }
  func.func @transform_11(%arg0: i32) -> (i32, i32) {
    %c0_i32 = arith.constant 0 : i32
    %c0_i32_0 = arith.constant 0 : i32
    return %arg0, %c0_i32 : i32, i32
  }
}

</mosaic_0001>

<bundles_post_ra>
// kernel: cnn_lstm_forward.1
= control target key start
LH: loop header
LB: loop body
LE: loop exit
PB: predicated region body
PF: predicated region fallthrough
CT: control target
= control target key end

     0   :  { %s2824_s17 = smov 0   ;;  %s2826_s18 = smov 0   ;;  %s3197_s0 = inlined_call_operand.vmem [shape: f32[8,16,6], index: 0, kind: input, shape index: {}]   ;;  %s3198_s1 = inlined_call_operand.vmem [shape: f32[18,64], index: 1, kind: input, shape index: {}]   ;;  %s3199_s2 = inlined_call_operand.vmem [shape: f32[1,64], index: 2, kind: input, shape index: {}]   ;;  %s3200_s3 = inlined_call_operand.vmem [shape: f32[64,48], index: 3, kind: input, shape index: {}]   ;;  %s3201_s4 = inlined_call_operand.vmem [shape: f32[12,48], index: 4, kind: input, shape index: {}]   ;;  %s3202_s5 = inlined_call_operand.vmem [shape: f32[1,48], index: 5, kind: input, shape index: {}]   ;;  %s3203_s6 = inlined_call_operand.vmem [shape: f32[12,48], index: 6, kind: input, shape index: {}]   ;;  %s3204_s7 = inlined_call_operand.vmem [shape: f32[12,48], index: 7, kind: input, shape index: {}]   ;;  %s3205_s8 = inlined_call_operand.vmem [shape: f32[1,48], index: 8, kind: input, shape index: {}]   ;;  %s3206_s9 = inlined_call_operand.vmem [shape: f32[12,3], index: 9, kind: input, shape index: {}]   ;;  %s3207_s10 = inlined_call_operand.vmem [shape: f32[1,3], index: 10, kind: input, shape index: {}]   ;;  %s3208_s11 = inlined_call_operand.vmem [shape: f32[16,3], index: 11, kind: output, shape index: {}]  }
   0x1   :  { %s2828_s19 = smov 0  }
   0x2 LB: > { %s2239_s20 = sadd.s32 4294967295, %s2753_s19   ;;  %s2841_s21 = sadd.s32 1, %s2753_s19   ;;  %s2753_s19 = sphi %s2828_s19, %s3213_s19   ;;  %s2749_s18 = sphi %s2826_s18, %s3212_s18   ;;  %s2745_s17 = sphi %s2824_s17, %s3211_s17  }
   0x3   : > { %s25_s22 = ssub.s32 %s2753_s19, %s2841_s21  ;;  %s28_s23 = sadd.s32 1, %s2749_s18 }
   0x4   : > { %p26_p0 = scmp.eq.s32.totalorder %s25_s22, 0  ;;  %p35_p1 = scmp.ne.s32.totalorder %s2749_s18, %s2745_s17 }
   0x5   : > { %p36_p2 = scmp.eq.s32.totalorder %s2753_s19, 0  ;;  %p2242_p4 = scmp.ge.s32.totalorder %s2753_s19, 2 }
   0x6   : > { %s2850_s24 = scalar_select %p26_p0, %s2749_s18, %s28_s23  }
   0x7   : > { %p37_p3 = por %p36_p2, %p35_p1  ;;  %327 = sbr.rel (%p2242_p4) target bundleno = 22 (0x16), region = 56 }
   0xe   : > { %330 = sbr.rel (!%p37_p3) target bundleno = 22 (0x16), region = 60  ;;  %s332_s25 = sand.u32 (%p37_p3), 1, %s2749_s18  }
   0xf   : > { %s2244_s26 = sshll.u32 (%p37_p3), %s2753_s19, 3  ;;  %s2243_s27 = sshll.u32 (%p37_p3), %s332_s25, 6 }
  0x10   : > { %s336_s30 = scalar_lea.vmem (%p37_p3), %s3197_s0, %s2244_s26  ;;  %s334_s12 = scalar_lea.vmem (%p37_p3), [#allocation2], %s2243_s27 }
  0x11   : > { %v378_v0 = vld [vmem:[%s336_s30] sm:$0xff] (%p37_p3)  ;;  %v380_v1 = vld [vmem:[%s336_s30 + $0x10] sm:$0xff] (%p37_p3) }
  0x12   : > { %v382_v2 = vld [vmem:[%s336_s30 + $0x20] sm:$0xff] (%p37_p3)  ;;  %379 = vst [vmem:[%s334_s12] sm:$0xff] (%p37_p3), %v378_v0  ;;  %381 = vst [vmem:[%s334_s12 + $0x8] sm:$0xff] (%p37_p3), %v380_v1  ;;  %v384_v3 = vld [vmem:[%s336_s30 + $0x30] sm:$0xff] (%p37_p3) }
  0x13   : > { %383 = vst [vmem:[%s334_s12 + $0x10] sm:$0xff] (%p37_p3), %v382_v2  ;;  %v386_v4 = vld [vmem:[%s336_s30 + $0x40] sm:$0xff] (%p37_p3)  ;;  %v388_v5 = vld [vmem:[%s336_s30 + $0x50] sm:$0xff] (%p37_p3)  ;;  %385 = vst [vmem:[%s334_s12 + $0x18] sm:$0xff] (%p37_p3), %v384_v3 }
  0x14   : > { %387 = vst [vmem:[%s334_s12 + $0x20] sm:$0xff] (%p37_p3), %v386_v4  ;;  %389 = vst [vmem:[%s334_s12 + $0x28] sm:$0xff] (%p37_p3), %v388_v5  ;;  %v390_v6 = vld [vmem:[%s336_s30 + $0x60] sm:$0xff] (%p37_p3)  ;;  %v392_v7 = vld [vmem:[%s336_s30 + $0x70] sm:$0xff] (%p37_p3) }
  0x15   : > { %391 = vst [vmem:[%s334_s12 + $0x30] sm:$0xff] %v390_v6  ;;  %393 = vst [vmem:[%s334_s12 + $0x38] sm:$0xff] %v392_v7 }
  0x16 PF: > { %p2245_p5 = scmp.ge.s32.totalorder %s2753_s19, 1  ;;  %p398_p6 = scmp.lt.s32.totalorder %s2753_s19, 3 }
  0x18   : > { %p399_p7 = pnand %p2245_p5, %p398_p6 }
  0x19   : > { %s405_s13 = sand.u32 (!%p399_p7), 1, %s2745_s17   ;;  %v512_v8 = vld [vmem:[%s3198_s1] sm:$0xff] (!%p399_p7)  ;;  %v513_v9 = vld [vmem:[%s3198_s1 + $0x8] sm:$0xff] (!%p399_p7)  ;;  %v514_v13 = vld [vmem:[%s3198_s1 + $0x10] sm:$0x3] (!%p399_p7)  ;;  %vm541_vm0 = vcmask (!%p399_p7), 1041408  }
  0x1a   : > { %402 = sbr.rel (%p399_p7) target bundleno = 8312 (0x2078), region = 98  ;;  %s2246_s23 = sshll.u32 (!%p399_p7), %s405_s13, 6  ;;  %v2524_v10 = vpack.c.bf16 (!%p399_p7), %v513_v9, %v512_v8  ;;  %v646_v15 = vld [vmem:[%s3200_s3] sm:$0xff] (!%p399_p7)  ;;  %v647_v16 = vld [vmem:[%s3200_s3 + $0x8] sm:$0xff] (!%p399_p7)  ;;  %v648_v18 = vld [vmem:[%s3200_s3 + $0x10] sm:$0xff] (!%p399_p7)  ;;  %v2757_v22 = vmov (!%p399_p7), 0.0|0.0  }
  0x1b   : > { %s2867_s25 = scalar_lea.vmem (!%p399_p7), [#allocation2], %s2246_s23  ;;  %s2755_s27 = smov (!%p399_p7), 6   ;;  %v2528_v17 = vpack.c.bf16 (!%p399_p7), %v647_v16, %v646_v15  ;;  %v649_v19 = vld [vmem:[%s3200_s3 + $0x18] sm:$0xff] (!%p399_p7)  ;;  %v650_v23 = vld [vmem:[%s3200_s3 + $0x20] sm:$0xff] (!%p399_p7)  ;;  %v651_v24 = vld [vmem:[%s3200_s3 + $0x28] sm:$0xff] (!%p399_p7)  ;;  %vm498_vm1 = vcmask (!%p399_p7), 48128  }
  0x1c   : > { %v448_v11 = vld [vmem:[%s2867_s25 + $0x8] sm:$0xff] (!%p399_p7)  ;;  %v2871_v12 = vld [vmem:[%s2867_s25 + $0x10] sm:$0xff] (!%p399_p7)  ;;  %2525 = vmatprep.subr.bf16.mxu0 (!%p399_p7), %v2524_v10  ;;  %s2756_s28 = smov (!%p399_p7), 12   ;;  %v450_v14 = vld [vmem:[%s2867_s25 + $0x18] sm:$0xff] (!%p399_p7)  ;;  %v2532_v20 = vpack.c.bf16 (!%p399_p7), %v649_v19, %v648_v18  ;;  %v2536_v26 = vpack.c.bf16 (!%p399_p7), %v651_v24, %v650_v23  ;;  %vm505_vm2 = vcmask (!%p399_p7), 97280   ;;  %vm522_vm3 = vcmask (!%p399_p7), 146432  }
  0x1d   : > { %461 = vrot.lane.b32.xlu0 (!%p399_p7), %v448_v11, %s2755_s27  ;;  %480 = vrot.lane.b32.xlu1 (!%p399_p7), %v2871_v12, %s2756_s28  ;;  %v451_v21 = vld [vmem:[%s2867_s25 + $0x20] sm:$0xff] (!%p399_p7)  ;;  %v452_v25 = vld [vmem:[%s2867_s25 + $0x28] sm:$0xff] (!%p399_p7)  ;;  %vm780_vm4 = vcmask (!%p399_p7), 1043456   ;;  %vm2758_vm5 = vmmov (!%p399_p7), 1   ;;  %vm2759_vm7 = vmmov (!%p399_p7), 0   ;;  %v2760_v61 = vmov (!%p399_p7), 0.0  }
  0x1e   : > { %2527 = vmatpush3.bf16.msra.mxu0 (!%p399_p7), %v2524_v10  ;;  %2529 = vmatprep.subr.bf16.mxu1 (!%p399_p7), %v2528_v17  ;;  %v453_v27 = vld [vmem:[%s2867_s25 + $0x30] sm:$0xff] (!%p399_p7)  ;;  %v454_v28 = vld [vmem:[%s2867_s25 + $0x38] sm:$0xff] (!%p399_p7)  ;;  %v447_v29 = vld [vmem:[%s2867_s25] sm:$0xff] (!%p399_p7)  ;;  %vm661_vm8 = vcmask (!%p399_p7), 523264   ;;  %s2761_s29 = smov (!%p399_p7), 104   ;;  %s2762_s30 = smov (!%p399_p7), 24  }
  0x1f   : > { %2384 = vmatprep.subr.msk.mxu0 (!%p399_p7), %vm541_vm0, %v514_v13  ;;  %2531 = vmatpush3.bf16.msra.mxu1 (!%p399_p7), %v2528_v17  ;;  %v775_v33 = vld [vmem:[%s3201_s4] sm:$0xff] (!%p399_p7)  ;;  %v776_v34 = vld [vmem:[%s3201_s4 + $0x8] sm:$0xf] (!%p399_p7)  ;;  %vm2929_vm6 = vmpackc.low (!%p399_p7), %vm780_vm4, %vm2758_vm5  ;;  %s2763_s12 = smov (!%p399_p7), 92   ;;  %p443_p8 = scmp.lt.s32.totalorder (!%p399_p7), %s2239_s20, 1  ;;  %vm2178_vm9 = vcmask (!%p399_p7), 23552  }
  0x20   : > { %2533 = vmatprep.subr.bf16.mxu1 (!%p399_p7), %v2532_v20  ;;  %v2926_v38 = vpack.c.bf16 (!%p399_p7), %v776_v34, %v775_v33  ;;  %v652_v58 = vld [vmem:[%s3200_s3 + $0x30] sm:$0xff] (!%p399_p7)  ;;  %v653_v59 = vld [vmem:[%s3200_s3 + $0x38] sm:$0xff] (!%p399_p7)  ;;  %v2248_v62 = vld [vmem:[%s3199_s2] ss:$0 sm:$0xff] (!%p399_p7) }
  0x21   : > { %463 = vrot.lane.b32.xlu0 %v2871_v12, %s2755_s27  ;;  %482 = vrot.lane.b32.xlu1 %v450_v14, %s2756_s28  ;;  %v2540_v60 = vpack.c.bf16 %v653_v59, %v652_v58  ;;  %v2256_v19 = vld [vmem:[%s3202_s5] ss:$0 sm:$0xff]  ;;  %s3215_s20 = smov (!%p443_p8, %s2239_s20), 1 }
  0x22   : > { %2385 = vmatpush3.msk.msra.mxu0 %vm541_vm0, %v514_v13  ;;  %v2305_v40 = vld [vmem:[%s3207_s10] ss:$0 sm:$0xff] }
  0x23   : > { %2544 = vmatprep.subr.bf16.mxu0 %v2757_v22  ;;  %2535 = vmatpush3.bf16.msra.mxu1 %v2532_v20 }
  0x24   : > { %2537 = vmatprep.subr.bf16.mxu1 %v2536_v26 }
  0x25   : > { %465 = vrot.lane.b32.xlu0 %v450_v14, %s2755_s27  ;;  %467 = vrot.lane.b32.xlu1 %v451_v21, %s2755_s27 }
  0x27   : > { %2539 = vmatpush3.bf16.msra.mxu1 %v2536_v26 }
  0x28   : > { %2541 = vmatprep.subr.bf16.mxu1 %v2540_v60 }
  0x29   : > { %484 = vrot.lane.b32.xlu0 %v451_v21, %s2756_s28  ;;  %486 = vrot.lane.b32.xlu1 %v452_v25, %s2756_s28 }
  0x2b   : > { %2543 = vmatpush3.bf16.msra.mxu1 %v2540_v60 }
  0x2c   : > { %2556 = vmatprep.subr.bf16.mxu1 %v2757_v22 }
  0x2d   : > { %469 = vrot.lane.b32.xlu0 %v452_v25, %s2755_s27  ;;  %471 = vrot.lane.b32.xlu1 %v453_v27, %s2755_s27 }
  0x31   : > { %488 = vrot.lane.b32.xlu0 %v453_v27, %s2756_s28  ;;  %490 = vrot.lane.b32.xlu1 %v454_v28, %s2756_s28 }
  0x8f   : > { %v462_v30 = vpop.permute.xlu0 %461  ;;  %v481_v31 = vpop.permute.xlu1 %480 }
  0x90   : > { %v499_v32 = vsel %vm498_vm1, %v447_v29, %v462_v30 }
  0x91   : > { %v506_v35 = vsel %vm505_vm2, %v499_v32, %v481_v31 }
  0x92   : > { %2386 = vmatprep.mubr.msk.f32.mxu0 %vm522_vm3, %v506_v35 }
  0x93   : > { %v464_v36 = vpop.permute.xlu0 %463  ;;  %v483_v37 = vpop.permute.xlu1 %482 }
  0x94   : > { %v500_v39 = vsel %vm498_vm1, %v448_v11, %v464_v36 }
  0x95   : > { %v507_v41 = vsel %vm505_vm2, %v500_v39, %v483_v37 }
  0x96   : > { %2387 = vmatmul.mubr.msk.f32.vlgmr.msra.gmra.mrb[0].mxu0 %vm522_vm3, %v507_v41 }
  0x97   : > { %v466_v42 = vpop.permute.xlu0 %465  ;;  %v468_v43 = vpop.permute.xlu1 %467  ;;  %2547 = vmatpush3.bf16.msk.msra.mxu0 %vm2929_vm6, %v2926_v38 }
  0x98   : > { %2548 = vmatprep.subr.bf16.mxu0 %v2757_v22  ;;  %v501_v44 = vsel %vm498_vm1, %v2871_v12, %v466_v42  ;;  %v502_v45 = vsel %vm498_vm1, %v450_v14, %v468_v43 }
  0x9b   : > { %v485_v46 = vpop.permute.xlu0 %484  ;;  %v487_v47 = vpop.permute.xlu1 %486 }
  0x9c   : > { %v508_v48 = vsel %vm505_vm2, %v501_v44, %v485_v46  ;;  %v509_v49 = vsel %vm505_vm2, %v502_v45, %v487_v47 }
  0x9d   : > { %2389 = vmatprep.mubr.msk.f32.mxu0 %vm522_vm3, %v508_v48 }
  0x9e   : > { %2390 = vmatmul.mubr.msk.f32.gmra.mrb[2].mxu0 %vm522_vm3, %v509_v49 }
  0x9f   : > { %v470_v50 = vpop.permute.xlu0 %469  ;;  %v472_v51 = vpop.permute.xlu1 %471 }
  0xa0   : > { %v503_v52 = vsel %vm498_vm1, %v451_v21, %v470_v50  ;;  %v504_v53 = vsel %vm498_vm1, %v452_v25, %v472_v51 }
  0xa3   : > { %v489_v54 = vpop.permute.xlu0 %488  ;;  %v491_v55 = vpop.permute.xlu1 %490 }
  0xa4   : > { %v510_v56 = vsel %vm505_vm2, %v503_v52, %v489_v54  ;;  %v511_v57 = vsel %vm505_vm2, %v504_v53, %v491_v55 }
  0xa5   : > { %2392 = vmatprep.mubr.msk.f32.mxu0 %vm522_vm3, %v510_v56 }
  0xa6   : > { %2393 = vmatmul.mubr.msk.f32.gmra.mrb[4].mxu0 %vm522_vm3, %v511_v57 }
  0xa7   : > { %2424 = vmatprep.mubr.msk.f32.mxu0 %vm2759_vm7, %v2760_v61 }
  0xaa   : > { %2425 = vmatmul.mubr.f32.vlgmr.msra.gmra.mrb[6].mxu0 %v2760_v61 }
  0xab   : > { %2551 = vmatpush3.bf16.msk.msra.mxu0 %vm2929_vm6, %v2926_v38  ;;  %2431 = vmatprep.mubr.msk.f32.mxu0 %vm2759_vm7, %v2760_v61 }
  0xac   : > { %2552 = vmatprep.subr.bf16.mxu0 %v2757_v22 }
 0x169   : > { %v2388_v63 = vpop.f32.mrb[0].mxu0 }
 0x16a   : > { %v617_v0 = vadd.f32 %v2388_v63, %v2248_v62  ;;  %v611_v1 = vpop.f32.mrb[1].mxu0 }
 0x16b   : > { %v612_v2 = vadd.f32 %v2248_v62, %v611_v1 }
 0x16c   : > { %v641_v4 = vmax.f32 %v617_v0, 0.0 }
 0x16d   : > { %v640_v3 = vmax.f32 %v612_v2, 0.0 }
 0x16f   : > { %2411 = vmatprep.mubr.msk.f32.mxu1 %vm661_vm8, %v640_v3 }
 0x170   : > { %2412 = vmatmul.mubr.msk.f32.vlgmr.msra.gmra.mrb[0].mxu1 %vm661_vm8, %v641_v4 }
 0x171   : > { %v2391_v5 = vpop.f32.mrb[2].mxu0  ;;  %2559 = vmatpush3.bf16.msk.msra.mxu1 %vm2929_vm6, %v2926_v38 }
 0x172   : > { %v627_v6 = vadd.f32 %v2391_v5, %v2248_v62  ;;  %v621_v7 = vpop.f32.mrb[3].mxu0  ;;  %2564 = vmatprep.subr.bf16.mxu1 %v2757_v22 }
 0x173   : > { %v622_v8 = vadd.f32 %v2248_v62, %v621_v7 }
 0x174   : > { %v643_v9 = vmax.f32 %v627_v6, 0.0 }
 0x175   : > { %v642_v10 = vmax.f32 %v622_v8, 0.0 }
 0x177   : > { %2414 = vmatprep.mubr.msk.f32.mxu1 %vm661_vm8, %v642_v10 }
 0x178   : > { %2415 = vmatmul.mubr.msk.f32.gmra.mrb[2].mxu1 %vm661_vm8, %v643_v9 }
 0x179   : > { %v2394_v11 = vpop.f32.mrb[4].mxu0 }
 0x17a   : > { %v637_v12 = vadd.f32 %v2394_v11, %v2248_v62  ;;  %v631_v13 = vpop.f32.mrb[5].mxu0 }
 0x17b   : > { %v632_v14 = vadd.f32 %v2248_v62, %v631_v13 }
 0x17c   : > { %v645_v15 = vmax.f32 %v637_v12, 0.0 }
 0x17d   : > { %v644_v16 = vmax.f32 %v632_v14, 0.0  ;;  %v850_v17 = vpop.f32.mrb[6].mxu0 }
 0x17e   : > { %v2426_v18 = vpop.f32.mrb[7].mxu0 }
 0x17f   : > { %2417 = vmatprep.mubr.msk.f32.mxu1 %vm661_vm8, %v644_v16 }
 0x180   : > { %2418 = vmatmul.mubr.msk.f32.gmra.mrb[4].mxu1 %vm661_vm8, %v645_v15 }
 0x181   : > { %2445 = vmatprep.mubr.msk.f32.mxu1 %vm2759_vm7, %v2760_v61 }
 0x243   : > { %v2413_v20 = vpop.f32.mrb[0].mxu1 }
 0x244   : > { %v752_v21 = vadd.f32 %v2413_v20, %v2256_v19  ;;  %v746_v23 = vpop.f32.mrb[1].mxu1 }
 0x245   : > { %v747_v24 = vadd.f32 %v2256_v19, %v746_v23 }
 0x247   : > { %v854_v25 = vadd.f32 %v850_v17, %v747_v24 }
 0x249   : > { %2635 = vtanh.f32 %v854_v25  ;;  %v2264_v35 = vmul.f32 -1.442695, %v854_v25 }
 0x24b   : > { %v2416_v26 = vpop.f32.mrb[2].mxu1  ;;  %2637 = vpow2.f32 %v2264_v35 }
 0x24c   : > { %v2986_v27 = vadd.f32 %v2416_v26, %v2256_v19  ;;  %v756_v28 = vpop.f32.mrb[3].mxu1 }
 0x24d   : > { %v757_v29 = vadd.f32 %v2256_v19, %v756_v28 }
 0x253   : > { %v2636_v30 = vpop.eup %2635  ;;  %v2419_v31 = vpop.f32.mrb[4].mxu1 }
 0x254   : > { %864 = vrot.lane.b32.xlu0 %v2636_v30, %s2761_s29  ;;  %v2989_v32 = vadd.f32 %v2419_v31, %v2256_v19  ;;  %v766_v33 = vpop.f32.mrb[5].mxu1 }
 0x255   : > { %v2991_v34 = vadd.f32 %v2256_v19, %v766_v33  ;;  %v2638_v36 = vpop.eup %2637 }
 0x256   : > { %v858_v37 = vadd.f32 1.0, %v2638_v36 }
 0x258   : > { %2639 = vrcp.f32 %v858_v37  ;;  %v1379_v37 = vld [vmem:[%s3203_s6] sm:$0xff] }
 0x262   : > { %v2640_v39 = vpop.eup %2639 }
 0x263   : > { %v862_v43 = vmul.f32 0.0, %v2640_v39 }
 0x2c6   : > { %v865_v41 = vpop.permute.xlu0 %864 }
 0x2c7   : > { %v867_v42 = vmul.f32 %v2640_v39, %v865_v41 }
 0x2c9   : > { %869 = vrot.lane.b32.xlu1 %v867_v42, %s2756_s28 }
 0x33b   : > { %v870_v44 = vpop.permute.xlu1 %869 }
 0x33c   : > { %v872_v45 = vadd.f32 %v870_v44, %v862_v43 }
 0x33e   : > { %2641 = vtanh.f32 %v872_v45 }
 0x348   : > { %v2642_v46 = vpop.eup %2641 }
 0x349   : > { %875 = vrot.lane.b32.xlu0 %v2642_v46, %s2762_s30 }
 0x3bb   : > { %v876_v47 = vpop.permute.xlu0 %875 }
 0x3bc   : > { %v878_v48 = vmul.f32 %v2640_v39, %v876_v47  ;;  %v1380_v39 = vld [vmem:[%s3203_s6 + $0x8] sm:$0xf] }
 0x3bd   : > { %v2568_v41 = vpack.c.bf16 %v1380_v39, %v1379_v37 }
 0x3be   : > { %880 = vrot.lane.b32.xlu1 %v878_v48, %s2763_s12 }
 0x430   : > { %v2996_v49 = vpop.permute.xlu1 %880 }
 0x431   : > { %2432 = vmatmul.mubr.msk.f32.vlgmr.msra.gmra.mrb[8].mxu0 %vm505_vm2, %v2996_v49 }
 0x432   : > { %2555 = vmatpush3.bf16.msk.msra.mxu0 %vm2929_vm6, %v2926_v38  ;;  %2438 = vmatprep.mubr.msk.f32.mxu0 %vm2759_vm7, %v2760_v61 }
 0x433   : > { %2560 = vmatprep.subr.bf16.mxu0 %v2757_v22 }
 0x504   : > { %v950_v50 = vpop.f32.mrb[8].mxu0 }
 0x505   : > { %v954_v51 = vadd.f32 %v950_v50, %v752_v21  ;;  %v2433_v52 = vpop.f32.mrb[9].mxu0 }
 0x507   : > { %2643 = vtanh.f32 %v954_v51  ;;  %v2267_v54 = vmul.f32 -1.442695, %v954_v51 }
 0x509   : > { %2645 = vpow2.f32 %v2267_v54 }
 0x511   : > { %v2644_v53 = vpop.eup %2643 }
 0x512   : > { %964 = vrot.lane.b32.xlu0 %v2644_v53, %s2761_s29 }
 0x513   : > { %v2646_v55 = vpop.eup %2645 }
 0x514   : > { %v958_v56 = vadd.f32 1.0, %v2646_v55 }
 0x516   : > { %2647 = vrcp.f32 %v958_v56 }
 0x520   : > { %v2648_v57 = vpop.eup %2647 }
 0x521   : > { %v962_v60 = vmul.f32 %v2648_v57, %v872_v45 }
 0x584   : > { %v965_v58 = vpop.permute.xlu0 %964 }
 0x585   : > { %v967_v59 = vmul.f32 %v2648_v57, %v965_v58 }
 0x587   : > { %969 = vrot.lane.b32.xlu1 %v967_v59, %s2756_s28 }
 0x5f9   : > { %v970_v62 = vpop.permute.xlu1 %969 }
 0x5fa   : > { %v972_v63 = vadd.f32 %v970_v62, %v962_v60 }
 0x5fc   : > { %2649 = vtanh.f32 %v972_v63 }
 0x606   : > { %v2650_v0 = vpop.eup %2649 }
 0x607   : > { %975 = vrot.lane.b32.xlu0 %v2650_v0, %s2762_s30  ;;  %v1492_v0 = vld [vmem:[%s3204_s7 + $0x8] sm:$0xf] }
 0x679   : > { %v976_v1 = vpop.permute.xlu0 %975 }
 0x67a   : > { %v978_v2 = vmul.f32 %v2648_v57, %v976_v1 }
 0x67c   : > { %980 = vrot.lane.b32.xlu1 %v978_v2, %s2763_s12 }
 0x6ee   : > { %v3010_v3 = vpop.permute.xlu1 %980 }
 0x6ef   : > { %2439 = vmatmul.mubr.msk.f32.vlgmr.msra.gmra.mrb[10].mxu0 %vm505_vm2, %v3010_v3 }
 0x6f0   : > { %2563 = vmatpush3.bf16.msk.msra.mxu0 %vm2929_vm6, %v2926_v38  ;;  %2452 = vmatprep.mubr.msk.f32.mxu0 %vm2759_vm7, %v2760_v61 }
 0x6f1   : > { %2570 = vmatprep.subr.msk.bf16.mxu0 %vm2929_vm6, %v2568_v41 }
 0x7c2   : > { %v1050_v4 = vpop.f32.mrb[10].mxu0 }
 0x7c3   : > { %v1054_v5 = vadd.f32 %v1050_v4, %v757_v29  ;;  %v2440_v6 = vpop.f32.mrb[11].mxu0 }
 0x7c5   : > { %2651 = vtanh.f32 %v1054_v5  ;;  %v2270_v8 = vmul.f32 -1.442695, %v1054_v5  ;;  %v3097_v5 = vld [vmem:[%s3205_s8] ss:$0 sm:$0xff] }
 0x7c7   : > { %2653 = vpow2.f32 %v2270_v8 }
 0x7cf   : > { %v2652_v7 = vpop.eup %2651 }
 0x7d0   : > { %1064 = vrot.lane.b32.xlu0 %v2652_v7, %s2761_s29 }
 0x7d1   : > { %v2654_v9 = vpop.eup %2653 }
 0x7d2   : > { %v1058_v10 = vadd.f32 1.0, %v2654_v9 }
 0x7d4   : > { %2655 = vrcp.f32 %v1058_v10 }
 0x7de   : > { %v2656_v11 = vpop.eup %2655 }
 0x7df   : > { %v1062_v14 = vmul.f32 %v2656_v11, %v972_v63  ;;  %v1491_v63 = vld [vmem:[%s3204_s7] sm:$0xff] }
 0x7e0   : > { %v3072_v1 = vpack.c.bf16 %v1492_v0, %v1491_v63 }
 0x842   : > { %v1065_v12 = vpop.permute.xlu0 %1064 }
 0x843   : > { %v1067_v13 = vmul.f32 %v2656_v11, %v1065_v12 }
 0x845   : > { %1069 = vrot.lane.b32.xlu1 %v1067_v13, %s2756_s28 }
 0x8b7   : > { %v1070_v15 = vpop.permute.xlu1 %1069 }
 0x8b8   : > { %v1072_v16 = vadd.f32 %v1070_v15, %v1062_v14 }
 0x8ba   : > { %2657 = vtanh.f32 %v1072_v16 }
 0x8c4   : > { %v2658_v17 = vpop.eup %2657 }
 0x8c5   : > { %1075 = vrot.lane.b32.xlu0 %v2658_v17, %s2762_s30 }
 0x937   : > { %v1076_v18 = vpop.permute.xlu0 %1075 }
 0x938   : > { %v1078_v19 = vmul.f32 %v2656_v11, %v1076_v18 }
 0x93a   : > { %1080 = vrot.lane.b32.xlu1 %v1078_v19, %s2763_s12 }
 0x9ac   : > { %v1081_v20 = vpop.permute.xlu1 %1080 }
 0x9ad   : > { %2446 = vmatmul.mubr.msk.f32.vlgmr.msra.gmra.mrb[6].mxu1 %vm505_vm2, %v1081_v20 }
 0x9ae   : > { %2567 = vmatpush3.bf16.msk.msra.mxu1 %vm2929_vm6, %v2926_v38  ;;  %2459 = vmatprep.mubr.msk.f32.mxu1 %vm2759_vm7, %v2760_v61 }
 0x9af   : > { %2574 = vmatprep.subr.bf16.mxu1 %v2757_v22 }
 0xa80   : > { %v1150_v21 = vpop.f32.mrb[6].mxu1 }
 0xa81   : > { %v1154_v23 = vadd.f32 %v1150_v21, %v2986_v27  ;;  %v2447_v24 = vpop.f32.mrb[7].mxu1 }
 0xa83   : > { %2659 = vtanh.f32 %v1154_v23  ;;  %v2273_v26 = vmul.f32 -1.442695, %v1154_v23 }
 0xa85   : > { %2661 = vpow2.f32 %v2273_v26 }
 0xa8d   : > { %v2660_v25 = vpop.eup %2659 }
 0xa8e   : > { %1164 = vrot.lane.b32.xlu0 %v2660_v25, %s2761_s29 }
 0xa8f   : > { %v2662_v28 = vpop.eup %2661 }
 0xa90   : > { %v1158_v29 = vadd.f32 1.0, %v2662_v28 }
 0xa92   : > { %2663 = vrcp.f32 %v1158_v29 }
 0xa9c   : > { %v2664_v30 = vpop.eup %2663 }
 0xa9d   : > { %v1162_v33 = vmul.f32 %v2664_v30, %v1072_v16 }
 0xb00   : > { %v1165_v38 = vpop.permute.xlu0 %1164 }
 0xb01   : > { %v1167_v31 = vmul.f32 %v2664_v30, %v1165_v38 }
 0xb03   : > { %1169 = vrot.lane.b32.xlu1 %v1167_v31, %s2756_s28 }
 0xb75   : > { %v1170_v35 = vpop.permute.xlu1 %1169 }
 0xb76   : > { %v1172_v36 = vadd.f32 %v1170_v35, %v1162_v33 }
 0xb78   : > { %2665 = vtanh.f32 %v1172_v36 }
 0xb82   : > { %v2666_v27 = vpop.eup %2665 }
 0xb83   : > { %1175 = vrot.lane.b32.xlu0 %v2666_v27, %s2762_s30 }
 0xbf5   : > { %v1176_v42 = vpop.permute.xlu0 %1175 }
 0xbf6   : > { %v1178_v43 = vmul.f32 %v2664_v30, %v1176_v42 }
 0xbf8   : > { %1180 = vrot.lane.b32.xlu1 %v1178_v43, %s2763_s12 }
 0xc6a   : > { %v1181_v44 = vpop.permute.xlu1 %1180 }
 0xc6b   : > { %2453 = vmatmul.mubr.msk.f32.vlgmr.msra.gmra.mrb[12].mxu0 %vm505_vm2, %v1181_v44 }
 0xc6c   : > { %2573 = vmatpush3.bf16.msk.msra.mxu0 %vm2929_vm6, %v2568_v41  ;;  %2466 = vmatprep.mubr.msk.f32.mxu0 %vm505_vm2, %v2996_v49 }
 0xc6d   : > { %2586 = vmatprep.subr.bf16.mxu0 %v2757_v22 }
 0xc6f   : > { %2467 = vmatmul.mubr.msk.f32.vlgmr.msra.gmra.mrb[14].mxu0 %vm505_vm2, %v3010_v3 }
 0xc70   : > { %2469 = vmatprep.mubr.msk.f32.mxu0 %vm505_vm2, %v1081_v20  ;;  %2589 = vmatpush3.bf16.msk.msra.mxu0 %vm2929_vm6, %v3072_v1 }
 0xc71   : > { %2594 = vmatprep.subr.bf16.mxu0 %v2757_v22 }
 0xc73   : > { %2470 = vmatmul.mubr.msk.f32.gmra.mrb[16].mxu0 %vm505_vm2, %v1181_v44 }
 0xd3e   : > { %v1250_v45 = vpop.f32.mrb[12].mxu0 }
 0xd3f   : > { %v1254_v46 = vadd.f32 %v1250_v45, %v2991_v34  ;;  %v2454_v47 = vpop.f32.mrb[13].mxu0 }
 0xd41   : > { %2667 = vtanh.f32 %v1254_v46  ;;  %v2276_v53 = vmul.f32 -1.442695, %v1254_v46 }
 0xd42   : > { %v3054_v48 = vpop.f32.mrb[14].mxu0 }
 0xd43   : > { %v1462_v50 = vpop.f32.mrb[15].mxu0  ;;  %2669 = vpow2.f32 %v2276_v53  ;;  %v1468_v28 = vadd.f32 %v3054_v48, %v3097_v5 }
 0xd44   : > { %v1463_v9 = vadd.f32 %v3097_v5, %v1462_v50 }
 0xd46   : > { %v3056_v51 = vpop.f32.mrb[16].mxu0 }
 0xd47   : > { %v3058_v49 = vpop.f32.mrb[17].mxu0 }
 0xd48   : > { %v1473_v0 = vadd.f32 %v3097_v5, %v3058_v49 }
 0xd4b   : > { %v2668_v52 = vpop.eup %2667 }
 0xd4c   : > { %1264 = vrot.lane.b32.xlu0 %v2668_v52, %s2761_s29 }
 0xd4d   : > { %v2670_v54 = vpop.eup %2669 }
 0xd4e   : > { %v1258_v55 = vadd.f32 1.0, %v2670_v54 }
 0xd50   : > { %2671 = vrcp.f32 %v1258_v55 }
 0xd5a   : > { %v2672_v56 = vpop.eup %2671 }
 0xd5b   : > { %v1262_v58 = vmul.f32 %v2672_v56, %v1172_v36 }
 0xdbe   : > { %v1265_v57 = vpop.permute.xlu0 %1264 }
 0xdbf   : > { %v1267_v34 = vmul.f32 %v2672_v56, %v1265_v57 }
 0xdc1   : > { %1269 = vrot.lane.b32.xlu1 %v1267_v34, %s2756_s28 }
 0xe33   : > { %v1270_v59 = vpop.permute.xlu1 %1269 }
 0xe34   : > { %v3062_v60 = vadd.f32 %v1270_v59, %v1262_v58 }
 0xe36   : > { %2673 = vtanh.f32 %v3062_v60 }
 0xe40   : > { %v2674_v62 = vpop.eup %2673 }
 0xe41   : > { %1275 = vrot.lane.b32.xlu0 %v2674_v62, %s2762_s30 }
 0xeb3   : > { %v1276_v2 = vpop.permute.xlu0 %1275 }
 0xeb4   : > { %v1278_v3 = vmul.f32 %v2672_v56, %v1276_v2 }
 0xeb6   : > { %1280 = vrot.lane.b32.xlu1 %v1278_v3, %s2763_s12 }
 0xf28   : > { %v1281_v4 = vpop.permute.xlu1 %1280 }
 0xf29   : > { %2460 = vmatmul.mubr.msk.f32.vlgmr.msra.gmra.mrb[8].mxu1 %vm505_vm2, %v1281_v4  ;;  %2472 = vmatprep.mubr.msk.f32.mxu0 %vm505_vm2, %v1281_v4 }
 0xf2a   : > { %2577 = vmatpush3.bf16.msk.msra.mxu1 %vm2929_vm6, %v3072_v1  ;;  %2479 = vmatprep.mubr.msk.f32.mxu1 %vm2759_vm7, %v2760_v61 }
 0xf2b   : > { %2578 = vmatprep.subr.bf16.mxu1 %v2757_v22 }
 0xf2d   : > { %2480 = vmatmul.mubr.f32.vlgmr.msra.gmra.mrb[10].mxu1 %v2760_v61 }
 0xf2e   : > { %2581 = vmatpush3.bf16.msk.msra.mxu1 %vm2929_vm6, %v3072_v1  ;;  %2486 = vmatprep.mubr.msk.f32.mxu1 %vm2759_vm7, %v2760_v61 }
 0xf2f   : > { %2582 = vmatprep.subr.bf16.mxu1 %v2757_v22 }
 0xffc   : > { %v1350_v6 = vpop.f32.mrb[8].mxu1 }
 0xffd   : > { %v1354_v7 = vadd.f32 %v1350_v6, %v2989_v32  ;;  %v2461_v8 = vpop.f32.mrb[9].mxu1 }
 0xfff   : > { %v2279_v46 = vmul.f32 -1.442695, %v1354_v7 }
0x1000   : > { %v1562_v10 = vpop.f32.mrb[10].mxu1 }
0x1001   : > { %v1566_v11 = vadd.f32 %v1562_v10, %v1463_v9  ;;  %v2481_v12 = vpop.f32.mrb[11].mxu1 }
0x1003   : > { %2675 = vtanh.f32 %v1566_v11  ;;  %v2289_v14 = vmul.f32 -1.442695, %v1566_v11 }
0x1005   : > { %2677 = vpow2.f32 %v2289_v14 }
0x100d   : > { %v2676_v13 = vpop.eup %2675 }
0x100e   : > { %1576 = vrot.lane.b32.xlu0 %v2676_v13, %s2761_s29 }
0x100f   : > { %v2678_v15 = vpop.eup %2677 }
0x1010   : > { %v1570_v16 = vadd.f32 1.0, %v2678_v15 }
0x1012   : > { %2679 = vrcp.f32 %v1570_v16 }
0x101c   : > { %v2680_v17 = vpop.eup %2679 }
0x101d   : > { %v1574_v32 = vmul.f32 0.0, %v2680_v17 }
0x1080   : > { %v1577_v18 = vpop.permute.xlu0 %1576 }
0x1081   : > { %v1579_v19 = vmul.f32 %v2680_v17, %v1577_v18 }
0x1083   : > { %1581 = vrot.lane.b32.xlu1 %v1579_v19, %s2756_s28 }
0x10f5   : > { %v1582_v20 = vpop.permute.xlu1 %1581 }
0x10f6   : > { %v1584_v21 = vadd.f32 %v1582_v20, %v1574_v32  ;;  %v1478_v32 = vadd.f32 %v3056_v51, %v3097_v5 }
0x10f8   : > { %2681 = vtanh.f32 %v1584_v21 }
0x1102   : > { %v2682_v23 = vpop.eup %2681 }
0x1103   : > { %1587 = vrot.lane.b32.xlu0 %v2682_v23, %s2762_s30 }
0x1175   : > { %v1588_v24 = vpop.permute.xlu0 %1587 }
0x1176   : > { %v1590_v25 = vmul.f32 %v2680_v17, %v1588_v24 }
0x1178   : > { %1592 = vrot.lane.b32.xlu1 %v1590_v25, %s2763_s12 }
0x11ea   : > { %v1593_v26 = vpop.permute.xlu1 %1592 }
0x11eb   : > { %2487 = vmatmul.mubr.msk.f32.vlgmr.msra.gmra.mrb[12].mxu1 %vm505_vm2, %v1593_v26 }
0x11ec   : > { %2585 = vmatpush3.bf16.msk.msra.mxu1 %vm2929_vm6, %v3072_v1  ;;  %2493 = vmatprep.mubr.msk.f32.mxu1 %vm2759_vm7, %v2760_v61 }
0x11ed   : > { %2590 = vmatprep.subr.bf16.mxu1 %v2757_v22 }
0x12be   : > { %v1662_v29 = vpop.f32.mrb[12].mxu1 }
0x12bf   : > { %v1666_v30 = vadd.f32 %v1662_v29, %v1468_v28  ;;  %v2488_v38 = vpop.f32.mrb[13].mxu1 }
0x12c1   : > { %2683 = vtanh.f32 %v1666_v30  ;;  %v2292_v33 = vmul.f32 -1.442695, %v1666_v30 }
0x12c3   : > { %2685 = vpow2.f32 %v2292_v33 }
0x12cb   : > { %v2684_v31 = vpop.eup %2683 }
0x12cc   : > { %1676 = vrot.lane.b32.xlu0 %v2684_v31, %s2761_s29 }
0x12cd   : > { %v2686_v35 = vpop.eup %2685 }
0x12ce   : > { %v1670_v36 = vadd.f32 1.0, %v2686_v35 }
0x12d0   : > { %2687 = vrcp.f32 %v1670_v36 }
0x12da   : > { %v2688_v27 = vpop.eup %2687 }
0x12db   : > { %v1674_v41 = vmul.f32 %v2688_v27, %v1584_v21 }
0x133e   : > { %v1677_v37 = vpop.permute.xlu0 %1676 }
0x133f   : > { %v1679_v39 = vmul.f32 %v2688_v27, %v1677_v37 }
0x1341   : > { %1681 = vrot.lane.b32.xlu1 %v1679_v39, %s2756_s28 }
0x13b3   : > { %v1682_v42 = vpop.permute.xlu1 %1681 }
0x13b4   : > { %v1684_v43 = vadd.f32 %v1682_v42, %v1674_v41 }
0x13b6   : > { %2689 = vtanh.f32 %v1684_v43 }
0x13b7   : > { %2691 = vtanh.f32 %v1354_v7 }
0x13b8   : > { %2693 = vpow2.f32 %v2279_v46 }
0x13c0   : > { %v2690_v44 = vpop.eup %2689 }
0x13c1   : > { %1687 = vrot.lane.b32.xlu0 %v2690_v44, %s2762_s30  ;;  %v2692_v45 = vpop.eup %2691 }
0x13c2   : > { %v2694_v47 = vpop.eup %2693 }
0x13c3   : > { %v1358_v48 = vadd.f32 1.0, %v2694_v47 }
0x13c5   : > { %1364 = vrot.lane.b32.xlu0 %v2692_v45, %s2761_s29  ;;  %2695 = vrcp.f32 %v1358_v48 }
0x13cf   : > { %v2696_v53 = vpop.eup %2695 }
0x13d0   : > { %v1362_v57 = vmul.f32 %v2696_v53, %v3062_v60 }
0x1433   : > { %v1688_v50 = vpop.permute.xlu0 %1687 }
0x1434   : > { %v1690_v52 = vmul.f32 %v2688_v27, %v1688_v50 }
0x1436   : > { %1692 = vrot.lane.b32.xlu1 %v1690_v52, %s2763_s12 }
0x1437   : > { %v1365_v54 = vpop.permute.xlu0 %1364 }
0x1438   : > { %v1367_v55 = vmul.f32 %v2696_v53, %v1365_v54 }
0x143a   : > { %1369 = vrot.lane.b32.xlu0 %v1367_v55, %s2756_s28 }
0x14a8   : > { %v1693_v56 = vpop.permute.xlu1 %1692 }
0x14a9   : > { %2494 = vmatmul.mubr.msk.f32.vlgmr.msra.gmra.mrb[14].mxu1 %vm505_vm2, %v1693_v56 }
0x14aa   : > { %2593 = vmatpush3.bf16.msk.msra.mxu1 %vm2929_vm6, %v3072_v1  ;;  %2507 = vmatprep.mubr.msk.f32.mxu1 %vm2759_vm7, %v2760_v61 }
0x14ab   : > { %2598 = vmatprep.subr.bf16.mxu1 %v2757_v22 }
0x14ac   : > { %v1370_v34 = vpop.permute.xlu0 %1369 }
0x14ad   : > { %v1372_v58 = vadd.f32 %v1370_v34, %v1362_v57 }
0x14af   : > { %2697 = vtanh.f32 %v1372_v58 }
0x14b9   : > { %v2698_v59 = vpop.eup %2697 }
0x14ba   : > { %1375 = vrot.lane.b32.xlu0 %v2698_v59, %s2762_s30 }
0x152c   : > { %v1376_v62 = vpop.permute.xlu0 %1375 }
0x152d   : > { %v1378_v63 = vmul.f32 %v2696_v53, %v1376_v62 }
0x152f   : > { %1389 = vrot.lane.b32.xlu0 %v1378_v63, %s2763_s12 }
0x157c   : > { %v1762_v2 = vpop.f32.mrb[14].mxu1 }
0x157d   : > { %v1766_v3 = vadd.f32 %v1762_v2, %v1473_v0  ;;  %v2495_v4 = vpop.f32.mrb[15].mxu1 }
0x157f   : > { %2699 = vtanh.f32 %v1766_v3  ;;  %v2295_v6 = vmul.f32 -1.442695, %v1766_v3 }
0x1581   : > { %2701 = vpow2.f32 %v2295_v6 }
0x1589   : > { %v2700_v60 = vpop.eup %2699 }
0x158a   : > { %1776 = vrot.lane.b32.xlu1 %v2700_v60, %s2761_s29 }
0x158b   : > { %v2702_v7 = vpop.eup %2701 }
0x158c   : > { %v1770_v8 = vadd.f32 1.0, %v2702_v7 }
0x158e   : > { %2703 = vrcp.f32 %v1770_v8  ;;  %v2091_v8 = vld [vmem:[%s3206_s9] sm:$0xff] }
0x1598   : > { %v2704_v9 = vpop.eup %2703 }
0x1599   : > { %v1774_v11 = vmul.f32 %v2704_v9, %v1684_v43 }
0x15a1   : > { %v1390_v22 = vpop.permute.xlu0 %1389 }
0x15a2   : > { %2473 = vmatmul.mubr.msk.f32.gmra.mrb[18].mxu0 %vm505_vm2, %v1390_v22 }
0x15a3   : > { %2500 = vmatprep.mubr.msk.f32.mxu0 %vm2759_vm7, %v2760_v61 }
0x15fc   : > { %v1777_v49 = vpop.permute.xlu1 %1776 }
0x15fd   : > { %v1779_v10 = vmul.f32 %v2704_v9, %v1777_v49 }
0x15ff   : > { %1781 = vrot.lane.b32.xlu1 %v1779_v10, %s2756_s28 }
0x1671   : > { %v1782_v12 = vpop.permute.xlu1 %1781 }
0x1672   : > { %v1784_v13 = vadd.f32 %v1782_v12, %v1774_v11 }
0x1674   : > { %2705 = vtanh.f32 %v1784_v13 }
0x1675   : > { %v3137_v14 = vpop.f32.mrb[18].mxu0 }
0x1676   : > { %v1482_v15 = vpop.f32.mrb[19].mxu0  ;;  %v1488_v34 = vadd.f32 %v3137_v14, %v3097_v5 }
0x1677   : > { %v1483_v37 = vadd.f32 %v3097_v5, %v1482_v15 }
0x167e   : > { %v2706_v16 = vpop.eup %2705 }
0x167f   : > { %1787 = vrot.lane.b32.xlu1 %v2706_v16, %s2762_s30 }
0x16f1   : > { %v1788_v17 = vpop.permute.xlu1 %1787 }
0x16f2   : > { %v1790_v18 = vmul.f32 %v2704_v9, %v1788_v17  ;;  %v2092_v9 = vld [vmem:[%s3206_s9 + $0x8] sm:$0xf] }
0x16f3   : > { %v2599_v49 = vpack.c.bf16 %v2092_v9, %v2091_v8 }
0x16f4   : > { %1792 = vrot.lane.b32.xlu1 %v1790_v18, %s2763_s12 }
0x1766   : > { %v1793_v19 = vpop.permute.xlu1 %1792 }
0x1767   : > { %2501 = vmatmul.mubr.msk.f32.vlgmr.msra.gmra.mrb[20].mxu0 %vm505_vm2, %v1793_v19 }
0x1768   : > { %2597 = vmatpush3.bf16.msk.msra.mxu0 %vm2929_vm6, %v3072_v1  ;;  %2514 = vmatprep.mubr.msk.f32.mxu0 %vm2759_vm7, %v2760_v61 }
0x183a   : > { %v1862_v20 = vpop.f32.mrb[20].mxu0 }
0x183b   : > { %v1866_v21 = vadd.f32 %v1862_v20, %v1478_v32  ;;  %v2502_v23 = vpop.f32.mrb[21].mxu0 }
0x183d   : > { %2707 = vtanh.f32 %v1866_v21  ;;  %v2298_v25 = vmul.f32 -1.442695, %v1866_v21 }
0x183f   : > { %2709 = vpow2.f32 %v2298_v25 }
0x1847   : > { %v2708_v24 = vpop.eup %2707 }
0x1848   : > { %1876 = vrot.lane.b32.xlu0 %v2708_v24, %s2761_s29 }
0x1849   : > { %v2710_v26 = vpop.eup %2709 }
0x184a   : > { %v1870_v28 = vadd.f32 1.0, %v2710_v26 }
0x184c   : > { %2711 = vrcp.f32 %v1870_v28 }
0x1856   : > { %v2712_v29 = vpop.eup %2711 }
0x1857   : > { %v1874_v38 = vmul.f32 %v2712_v29, %v1784_v13 }
0x18ba   : > { %v1877_v1 = vpop.permute.xlu0 %1876 }
0x18bb   : > { %v1879_v30 = vmul.f32 %v2712_v29, %v1877_v1 }
0x18bd   : > { %1881 = vrot.lane.b32.xlu1 %v1879_v30, %s2756_s28 }
0x192f   : > { %v1882_v31 = vpop.permute.xlu1 %1881 }
0x1930   : > { %v1884_v51 = vadd.f32 %v1882_v31, %v1874_v38 }
0x1932   : > { %2713 = vtanh.f32 %v1884_v51 }
0x193c   : > { %v2714_v33 = vpop.eup %2713 }
0x193d   : > { %1887 = vrot.lane.b32.xlu0 %v2714_v33, %s2762_s30 }
0x19af   : > { %v1888_v35 = vpop.permute.xlu0 %1887 }
0x19b0   : > { %v1890_v36 = vmul.f32 %v2712_v29, %v1888_v35 }
0x19b2   : > { %1892 = vrot.lane.b32.xlu1 %v1890_v36, %s2763_s12 }
0x1a24   : > { %v1893_v27 = vpop.permute.xlu1 %1892 }
0x1a25   : > { %2508 = vmatmul.mubr.msk.f32.vlgmr.msra.gmra.mrb[16].mxu1 %vm505_vm2, %v1893_v27 }
0x1a26   : > { %2521 = vmatprep.mubr.msk.f32.mxu1 %vm2759_vm7, %v2760_v61  ;;  %2601 = vmatpush3.bf16.msk.msra.mxu1 %vm2929_vm6, %v2599_v49 }
0x1af8   : > { %v1962_v39 = vpop.f32.mrb[16].mxu1 }
0x1af9   : > { %v1966_v41 = vadd.f32 %v1962_v39, %v1483_v37  ;;  %v2509_v42 = vpop.f32.mrb[17].mxu1 }
0x1afb   : > { %2715 = vtanh.f32 %v1966_v41  ;;  %v2301_v44 = vmul.f32 -1.442695, %v1966_v41 }
0x1afd   : > { %2717 = vpow2.f32 %v2301_v44 }
0x1b05   : > { %v2716_v43 = vpop.eup %2715 }
0x1b06   : > { %1976 = vrot.lane.b32.xlu0 %v2716_v43, %s2761_s29 }
0x1b07   : > { %v2718_v45 = vpop.eup %2717 }
0x1b08   : > { %v1970_v46 = vadd.f32 1.0, %v2718_v45 }
0x1b0a   : > { %2719 = vrcp.f32 %v1970_v46 }
0x1b14   : > { %v2720_v47 = vpop.eup %2719 }
0x1b15   : > { %v1974_v61 = vmul.f32 %v2720_v47, %v1884_v51 }
0x1b78   : > { %v1977_v48 = vpop.permute.xlu0 %1976 }
0x1b79   : > { %v1979_v50 = vmul.f32 %v2720_v47, %v1977_v48 }
0x1b7b   : > { %1981 = vrot.lane.b32.xlu1 %v1979_v50, %s2756_s28 }
0x1bed   : > { %v1982_v52 = vpop.permute.xlu1 %1981 }
0x1bee   : > { %v1984_v53 = vadd.f32 %v1982_v52, %v1974_v61 }
0x1bf0   : > { %2721 = vtanh.f32 %v1984_v53 }
0x1bfa   : > { %v2722_v54 = vpop.eup %2721 }
0x1bfb   : > { %1987 = vrot.lane.b32.xlu0 %v2722_v54, %s2762_s30 }
0x1c6d   : > { %v1988_v55 = vpop.permute.xlu0 %1987 }
0x1c6e   : > { %v1990_v56 = vmul.f32 %v2720_v47, %v1988_v55 }
0x1c70   : > { %1992 = vrot.lane.b32.xlu1 %v1990_v56, %s2763_s12 }
0x1ce2   : > { %v1993_v57 = vpop.permute.xlu1 %1992 }
0x1ce3   : > { %2515 = vmatmul.mubr.msk.f32.vlgmr.msra.gmra.mrb[22].mxu0 %vm505_vm2, %v1993_v57 }
0x1db6   : > { %v2062_v58 = vpop.f32.mrb[22].mxu0 }
0x1db7   : > { %v2066_v59 = vadd.f32 %v2062_v58, %v1488_v34  ;;  %v2516_v62 = vpop.f32.mrb[23].mxu0 }
0x1db9   : > { %2723 = vtanh.f32 %v2066_v59  ;;  %v2304_v0 = vmul.f32 -1.442695, %v2066_v59 }
0x1dbb   : > { %2725 = vpow2.f32 %v2304_v0 }
0x1dc3   : > { %v2724_v63 = vpop.eup %2723 }
0x1dc4   : > { %2076 = vrot.lane.b32.xlu0 %v2724_v63, %s2761_s29 }
0x1dc5   : > { %v2726_v2 = vpop.eup %2725 }
0x1dc6   : > { %v2070_v3 = vadd.f32 1.0, %v2726_v2 }
0x1dc8   : > { %2727 = vrcp.f32 %v2070_v3 }
0x1dd2   : > { %v2728_v4 = vpop.eup %2727 }
0x1dd3   : > { %v2074_v6 = vmul.f32 %v2728_v4, %v1984_v53 }
0x1e36   : > { %v2077_v60 = vpop.permute.xlu0 %2076 }
0x1e37   : > { %v2079_v22 = vmul.f32 %v2728_v4, %v2077_v60 }
0x1e39   : > { %2081 = vrot.lane.b32.xlu1 %v2079_v22, %s2756_s28  ;;  %s2247_s28 = sshll.u32 %s3215_s20, 3 }
0x1eab   : > { %v2082_v5 = vpop.permute.xlu1 %2081 }
0x1eac   : > { %v2084_v7 = vadd.f32 %v2082_v5, %v2074_v6 }
0x1eae   : > { %2729 = vtanh.f32 %v2084_v7 }
0x1eb8   : > { %v2730_v10 = vpop.eup %2729 }
0x1eb9   : > { %2087 = vrot.lane.b32.xlu0 %v2730_v10, %s2762_s30  ;;  %s446_s30 = scalar_lea.vmem %s3208_s11, %s2247_s28 }
0x1f2b   : > { %v2088_v11 = vpop.permute.xlu0 %2087 }
0x1f2c   : > { %v2090_v12 = vmul.f32 %v2728_v4, %v2088_v11 }
0x1f2e   : > { %2101 = vrot.lane.b32.xlu1 %v2090_v12, %s2763_s12 }
0x1fa0   : > { %v2102_v13 = vpop.permute.xlu1 %2101 }
0x1fa1   : > { %2522 = vmatmul.mubr.msk.f32.vlgmr.msra.gmra.mrb[18].mxu1 %vm505_vm2, %v2102_v13 }
0x2074   : > { %v2174_v14 = vpop.f32.mrb[18].mxu1 }
0x2075   : > { %v2175_v15 = vadd.f32 %v2305_v40, %v2174_v14  ;;  %v2523_v16 = vpop.f32.mrb[19].mxu1 }
0x2077   : > { %2179 = vst.msk [vmem:[%s446_s30] sm:$0xff] %vm2178_vm9, %v2175_v15 }
0x2078 PF: > { %p18_p9 = scmp.ge.s32.totalorder %s2841_s21, 4   ;;  %s3211_s17 = smov %s2749_s18 }
0x2079   : > { %s3212_s18 = smov %s2850_s24  ;;  %s3213_s19 = smov %s2841_s21 }
0x207a   :  { %20 = sbr.rel (!%p18_p9) target bundleno = 2 (0x2), region = 137 }

</bundles_post_ra>
